<compile_context>
chip_gen: v5e
topology: v5e:2x2
jax: 0.10.0
libtpu: 0.0.40
codegen_flags: <defaults>
</compile_context>

<pallas_src>
import jax
import jax.numpy as jnp
from jax.experimental import pallas as pl
from jax.experimental.pallas import tpu as pltpu

_EPS = 1e-5


# --------------------------------------------------------------------------
# Kernels (each grid step handles one image-group, lane layout (H, G*W*C)).
# --------------------------------------------------------------------------
def _conv_stats_kernel(x_ref, band_ref, y_ref, st_ref):
    """3x3 'same' conv (bias-free) + per-group BN partial stats.

    x_ref    : (1, H, G*W*Ci)      lane-layout input group
    band_ref : (3, G*W*Ci, G*W*Co) block-diag banded weights (kx taps + W pad)
    y_ref    : (1, H, G*W*Co)      raw conv output (pre-BN)
    st_ref   : (1, 2, G*W*Co)      row0 = sum over H, row1 = sum of squares
    """
    H = x_ref.shape[1]
    x = x_ref[0]                                          # (H, G*W*Ci)
    zrow = jnp.zeros((1, x.shape[1]), jnp.float32)
    xp = jnp.concatenate([zrow, x, zrow], axis=0)         # (H+2, G*W*Ci) H-halo
    acc = jnp.zeros((H, band_ref.shape[2]), jnp.float32)
    for ky in range(3):                                   # 3 MXU calls, K = G*W*Ci
        acc = acc + jnp.dot(xp[ky:ky + H, :], band_ref[ky],
                            preferred_element_type=jnp.float32)
    y_ref[0] = acc
    st_ref[0] = jnp.concatenate(
        [jnp.sum(acc, axis=0, keepdims=True),
         jnp.sum(acc * acc, axis=0, keepdims=True)], axis=0)


def _bn_relu_conv_stats_kernel(y_ref, aff_ref, band_ref, o_ref, st_ref):
    """Fused BN(scale,shift)+ReLU of the previous conv, then the next 3x3 conv.

    y_ref    : (1, H, G*W*Ci)      raw previous conv output
    aff_ref  : (2, G*W*Ci)         row0 = scale, row1 = shift (per channel lane)
    band_ref : (3, G*W*Ci, G*W*Co)
    o_ref    : (1, H, G*W*Co)      raw conv output (pre-BN)
    st_ref   : (1, 2, G*W*Co)
    """
    H = y_ref.shape[1]
    aff = aff_ref[...]
    a = jnp.maximum(y_ref[0] * aff[0:1, :] + aff[1:2, :], 0.0)   # bn + relu
    zrow = jnp.zeros((1, a.shape[1]), jnp.float32)
    ap = jnp.concatenate([zrow, a, zrow], axis=0)
    acc = jnp.zeros((H, band_ref.shape[2]), jnp.float32)
    for ky in range(3):
        acc = acc + jnp.dot(ap[ky:ky + H, :], band_ref[ky],
                            preferred_element_type=jnp.float32)
    o_ref[0] = acc
    st_ref[0] = jnp.concatenate(
        [jnp.sum(acc, axis=0, keepdims=True),
         jnp.sum(acc * acc, axis=0, keepdims=True)], axis=0)


def _bn_relu_kernel(y_ref, aff_ref, o_ref):
    """Final fused BN(scale,shift) + ReLU."""
    aff = aff_ref[...]
    o_ref[0] = jnp.maximum(y_ref[0] * aff[0:1, :] + aff[1:2, :], 0.0)


# --------------------------------------------------------------------------
# Host-side helpers.
# --------------------------------------------------------------------------
def _banded_weight(w_oihw, width):
    """PyTorch (Co, Ci, 3, 3) conv weight -> (3, W*Ci, W*Co) banded matrices.

    band[ky][(w + kx - 1)*Ci + c, w*Co + m] = w[m, c, ky, kx]; entries whose
    input column (w + kx - 1) falls outside [0, W) are dropped, which
    implements the W-side 'same' zero padding.
    """
    taps = jnp.transpose(w_oihw, (2, 3, 1, 0)).astype(jnp.float32)  # (ky,kx,Ci,Co)
    bands = []
    for ky in range(3):
        b = jnp.zeros((width * taps.shape[2], width * taps.shape[3]), jnp.float32)
        for kx in range(3):
            sel = jnp.eye(width, k=1 - kx, dtype=jnp.float32)  # ones at [w+kx-1, w]
            b = b + jnp.kron(sel, taps[ky, kx])
        bands.append(b)
    return jnp.stack(bands)


def _group_bands(band, group):
    """(3, W*Ci, W*Co) -> block-diagonal (3, G*W*Ci, G*W*Co) for lane packing."""
    if group == 1:
        return band
    eyeg = jnp.eye(group, dtype=jnp.float32)
    return jnp.stack([jnp.kron(eyeg, band[k]) for k in range(band.shape[0])])


def _pick_group(n, width, c_min, c_max, lane_target=128, band_cap=512):
    """Smallest divisor of n so the narrowest lane dim reaches >=128 lanes
    (keeping the banded weight's side <= band_cap)."""
    g = 1
    for cand in range(1, n + 1):
        if n % cand:
            continue
        if cand > 1 and cand * width * c_max > band_cap:
            break
        g = cand
        if cand * width * c_min >= lane_target:
            break
    return g


def _affine_from_stats(stats, gamma, beta, count, group, width, chans):
    """(N/G, 2, G*W*C) partial sums -> (2, G*W*C) fused BN scale/shift lanes."""
    s = stats[:, 0, :].reshape(-1, group, width, chans).sum(axis=(0, 1, 2))
    q = stats[:, 1, :].reshape(-1, group, width, chans).sum(axis=(0, 1, 2))
    mean = s / count
    var = q / count - mean * mean            # biased variance (PyTorch training fwd)
    scale = gamma.astype(jnp.float32) * jax.lax.rsqrt(var + _EPS)
    shift = beta.astype(jnp.float32) - mean * scale
    return jnp.stack([jnp.tile(scale, group * width),
                      jnp.tile(shift, group * width)])           # (2, G*W*C)


@jax.jit
def two_conv_block(x_nchw, params):
    """TwoConvBlock forward. x_nchw: (N, Cin, H, W) f32 -> (N, Cout, H, W) f32."""
    w1, b1, g1, bt1, w2, b2, g2, bt2 = params
    del b1, b2   # conv biases cancel exactly under batch-statistics BatchNorm
    N, Cin, H, W = x_nchw.shape
    Cm, Cout = w1.shape[0], w2.shape[0]

    G = _pick_group(N, W, min(Cin, Cm, Cout), max(Cin, Cm, Cout))
    NG = N // G
    Li, Lm, Lo = G * W * Cin, G * W * Cm, G * W * Cout

    # NCHW -> lane layout (N/G, H, G*W*Cin).  Boundary transpose kept in the
    # wrapper because the public interface is NCHW (PyTorch convention).
    x_lane = (jnp.transpose(x_nchw, (0, 2, 3, 1)).astype(jnp.float32)
              .reshape(NG, G, H, W, Cin)
              .transpose(0, 2, 1, 3, 4)
              .reshape(NG, H, Li))

    band1 = _group_bands(_banded_weight(w1, W), G)        # (3, Li, Lm)
    band2 = _group_bands(_banded_weight(w2, W), G)        # (3, Lm, Lo)

    cparams = pltpu.CompilerParams(dimension_semantics=("parallel",))

    # Pass 1: conv1 (+ per-group BN1 partial stats).
    y1, st1 = pl.pallas_call(
        _conv_stats_kernel,
        grid=(NG,),
        in_specs=[
            pl.BlockSpec((1, H, Li), lambda n: (n, 0, 0)),
            pl.BlockSpec((3, Li, Lm), lambda n: (0, 0, 0)),
        ],
        out_specs=[
            pl.BlockSpec((1, H, Lm), lambda n: (n, 0, 0)),
            pl.BlockSpec((1, 2, Lm), lambda n: (n, 0, 0)),
        ],
        out_shape=(
            jax.ShapeDtypeStruct((NG, H, Lm), jnp.float32),
            jax.ShapeDtypeStruct((NG, 2, Lm), jnp.float32),
        ),
        compiler_params=cparams,
    )(x_lane, band1)

    aff1 = _affine_from_stats(st1, g1, bt1, N * H * W, G, W, Cm)   # (2, Lm)

    # Pass 2: bn1 + relu fused into conv2 (+ per-group BN2 partial stats).
    y2, st2 = pl.pallas_call(
        _bn_relu_conv_stats_kernel,
        grid=(NG,),
        in_specs=[
            pl.BlockSpec((1, H, Lm), lambda n: (n, 0, 0)),
            pl.BlockSpec((2, Lm), lambda n: (0, 0)),
            pl.BlockSpec((3, Lm, Lo), lambda n: (0, 0, 0)),
        ],
        out_specs=[
            pl.BlockSpec((1, H, Lo), lambda n: (n, 0, 0)),
            pl.BlockSpec((1, 2, Lo), lambda n: (n, 0, 0)),
        ],
        out_shape=(
            jax.ShapeDtypeStruct((NG, H, Lo), jnp.float32),
            jax.ShapeDtypeStruct((NG, 2, Lo), jnp.float32),
        ),
        compiler_params=cparams,
    )(y1, aff1, band2)

    aff2 = _affine_from_stats(st2, g2, bt2, N * H * W, G, W, Cout)  # (2, Lo)

    # Pass 3: bn2 + relu.
    out_lane = pl.pallas_call(
        _bn_relu_kernel,
        grid=(NG,),
        in_specs=[
            pl.BlockSpec((1, H, Lo), lambda n: (n, 0, 0)),
            pl.BlockSpec((2, Lo), lambda n: (0, 0)),
        ],
        out_specs=pl.BlockSpec((1, H, Lo), lambda n: (n, 0, 0)),
        out_shape=jax.ShapeDtypeStruct((NG, H, Lo), jnp.float32),
        compiler_params=cparams,
    )(y2, aff2)

    # lane layout -> NCHW
    return (out_lane.reshape(NG, H, G, W, Cout)
            .transpose(0, 2, 4, 1, 3)
            .reshape(N, Cout, H, W))


# --------------------------------------------------------------------------
# Pure-JAX reference (includes conv biases; checks the bias-cancellation).
# --------------------------------------------------------------------------
def _reference(x_nchw, params):
    w1, b1, g1, bt1, w2, b2, g2, bt2 = params

    def conv(x, w, b):
        y = jax.lax.conv_general_dilated(
            x, w, window_strides=(1, 1), padding='SAME',
            dimension_numbers=('NCHW', 'OIHW', 'NCHW'))
        return y + b[None, :, None, None]

    def bn(x, g, bt):
        mean = jnp.mean(x, axis=(0, 2, 3), keepdims=True)
        var = jnp.mean((x - mean) ** 2, axis=(0, 2, 3), keepdims=True)
        return (x - mean) * jax.lax.rsqrt(var + _EPS) * g[None, :, None, None] \
            + bt[None, :, None, None]

    y = jax.nn.relu(bn(conv(x_nchw, w1, b1), g1, bt1))
    z = jax.nn.relu(bn(conv(y, w2, b2), g2, bt2))
    return z


if __name__ == "__main__":
    key = jax.random.PRNGKey(0)
    N, Cin, Cm, Cout, H, W = 2, 4, 8, 4, 16, 16

    ks = jax.random.split(key, 6)
    x = jax.random.normal(ks[0], (N, Cin, H, W), jnp.float32)

    # Synthetic params; shapes match nn.Conv2d / nn.BatchNorm2d.
    w1 = 0.1 * jax.random.normal(ks[1], (Cm, Cin, 3, 3), jnp.float32)
    b1 = 0.1 * jax.random.normal(ks[2], (Cm,), jnp.float32)
    g1 = jnp.ones((Cm,), jnp.float32)
    bt1 = jnp.zeros((Cm,), jnp.float32)
    w2 = 0.1 * jax.random.normal(ks[3], (Cout, Cm, 3, 3), jnp.float32)
    b2 = 0.1 * jax.random.normal(ks[4], (Cout,), jnp.float32)
    g2 = jnp.ones((Cout,), jnp.float32)
    bt2 = jnp.zeros((Cout,), jnp.float32)

    params = (w1, b1, g1, bt1, w2, b2, g2, bt2)

    out = jax.block_until_ready(two_conv_block(x, params))
    ref = jax.block_until_ready(_reference(x, params))

    assert out.shape == (N, Cout, H, W), out.shape
    assert jnp.allclose(out, ref, atol=1e-4, rtol=1e-4), \
        float(jnp.max(jnp.abs(out - ref)))

    print("KERNEL_OK")
</pallas_src>

<mosaic_0001>
module attributes {stable_mosaic.version = 11 : i64} {
  func.func @_conv_stats_kernel(%arg0: i32, %arg1: memref<1x16x128xf32, #tpu.memory_space<vmem>>, %arg2: memref<3x128x256xf32, #tpu.memory_space<vmem>>, %arg3: memref<1x16x256xf32, #tpu.memory_space<vmem>>, %arg4: memref<1x2x256xf32, #tpu.memory_space<vmem>>) attributes {dimension_semantics = [#tpu.dimension_semantics<parallel>], iteration_bounds = array<i64: 1>, scalar_prefetch = 0 : i64, scratch_operands = 0 : i64, tpu.core_type = #tpu.core_type<tc>, window_params = [{transform_indices = @transform_0, window_bounds = array<i64: 1, 16, 128>}, {pipeline_mode = #tpu.pipeline_mode<synchronous>, transform_indices = @transform_1, window_bounds = array<i64: 3, 128, 256>}, {transform_indices = @transform_2, window_bounds = array<i64: 1, 16, 256>}, {transform_indices = @transform_3, window_bounds = array<i64: 1, 2, 256>}]} {
    %c0 = arith.constant 0 : index
    %c0_0 = arith.constant 0 : index
    %c0_1 = arith.constant 0 : index
    %0 = vector.load %arg1[%c0, %c0_0, %c0_1] : memref<1x16x128xf32, #tpu.memory_space<vmem>>, vector<1x16x128xf32>
    %1 = vector.shape_cast %0 : vector<1x16x128xf32> to vector<16x128xf32>
    %cst = arith.constant 0.000000e+00 : f32
    %2 = vector.broadcast %cst : f32 to vector<1x128xf32>
    %3 = tpu.concatenate %2, %1, %2 in 0 : vector<1x128xf32>, vector<16x128xf32>, vector<1x128xf32> -> vector<18x128xf32>
    %cst_2 = arith.constant 0.000000e+00 : f32
    %4 = vector.broadcast %cst_2 : f32 to vector<16x256xf32>
    %5 = vector.extract_strided_slice %3 {offsets = [0, 0], sizes = [16, 128], strides = [1, 1]} : vector<18x128xf32> to vector<16x128xf32>
    %c0_3 = arith.constant 0 : index
    %c0_4 = arith.constant 0 : index
    %c0_5 = arith.constant 0 : index
    %6 = vector.load %arg2[%c0_3, %c0_4, %c0_5] : memref<3x128x256xf32, #tpu.memory_space<vmem>>, vector<1x128x256xf32>
    %7 = vector.shape_cast %6 : vector<1x128x256xf32> to vector<128x256xf32>
    %cst_6 = arith.constant dense<0.000000e+00> : vector<16x256xf32>
    %8 = tpu.matmul %5, %7, %cst_6 {dimension_numbers = #tpu.dot_dimension_numbers<[1], [0], [0], [1], [0, 0, 1, 1], [], []>} : vector<16x128xf32>, vector<128x256xf32>, vector<16x256xf32> -> vector<16x256xf32>
    %9 = arith.addf %4, %8 : vector<16x256xf32>
    %10 = vector.extract_strided_slice %3 {offsets = [1, 0], sizes = [16, 128], strides = [1, 1]} : vector<18x128xf32> to vector<16x128xf32>
    %c1 = arith.constant 1 : index
    %c0_7 = arith.constant 0 : index
    %c0_8 = arith.constant 0 : index
    %11 = vector.load %arg2[%c1, %c0_7, %c0_8] : memref<3x128x256xf32, #tpu.memory_space<vmem>>, vector<1x128x256xf32>
    %12 = vector.shape_cast %11 : vector<1x128x256xf32> to vector<128x256xf32>
    %cst_9 = arith.constant dense<0.000000e+00> : vector<16x256xf32>
    %13 = tpu.matmul %10, %12, %cst_9 {dimension_numbers = #tpu.dot_dimension_numbers<[1], [0], [0], [1], [0, 0, 1, 1], [], []>} : vector<16x128xf32>, vector<128x256xf32>, vector<16x256xf32> -> vector<16x256xf32>
    %14 = arith.addf %9, %13 : vector<16x256xf32>
    %15 = vector.extract_strided_slice %3 {offsets = [2, 0], sizes = [16, 128], strides = [1, 1]} : vector<18x128xf32> to vector<16x128xf32>
    %c2 = arith.constant 2 : index
    %c0_10 = arith.constant 0 : index
    %c0_11 = arith.constant 0 : index
    %16 = vector.load %arg2[%c2, %c0_10, %c0_11] : memref<3x128x256xf32, #tpu.memory_space<vmem>>, vector<1x128x256xf32>
    %17 = vector.shape_cast %16 : vector<1x128x256xf32> to vector<128x256xf32>
    %cst_12 = arith.constant dense<0.000000e+00> : vector<16x256xf32>
    %18 = tpu.matmul %15, %17, %cst_12 {dimension_numbers = #tpu.dot_dimension_numbers<[1], [0], [0], [1], [0, 0, 1, 1], [], []>} : vector<16x128xf32>, vector<128x256xf32>, vector<16x256xf32> -> vector<16x256xf32>
    %19 = arith.addf %14, %18 : vector<16x256xf32>
    %c0_13 = arith.constant 0 : index
    %c0_14 = arith.constant 0 : index
    %c0_15 = arith.constant 0 : index
    %20 = vector.load %arg3[%c0_13, %c0_14, %c0_15] : memref<1x16x256xf32, #tpu.memory_space<vmem>>, vector<1x16x256xf32>
    %21 = vector.shape_cast %20 : vector<1x16x256xf32> to vector<16x256xf32>
    %22 = vector.shape_cast %19 : vector<16x256xf32> to vector<1x16x256xf32>
    tpu.vector_store %arg3[%c0_13, %c0_14, %c0_15], %22 {strides = array<i32>} : memref<1x16x256xf32, #tpu.memory_space<vmem>>, vector<1x16x256xf32>,
    %cst_16 = arith.constant dense<0.000000e+00> : vector<256xf32>
    %23 = vector.multi_reduction <add>, %19, %cst_16 [0] : vector<16x256xf32> to vector<256xf32>
    %24 = vector.shape_cast %23 : vector<256xf32> to vector<1x256xf32>
    %25 = arith.mulf %19, %19 : vector<16x256xf32>
    %cst_17 = arith.constant dense<0.000000e+00> : vector<256xf32>
    %26 = vector.multi_reduction <add>, %25, %cst_17 [0] : vector<16x256xf32> to vector<256xf32>
    %27 = vector.shape_cast %26 : vector<256xf32> to vector<1x256xf32>
    %28 = tpu.concatenate %24, %27 in 0 : vector<1x256xf32>, vector<1x256xf32> -> vector<2x256xf32>
    %c0_18 = arith.constant 0 : index
    %c0_19 = arith.constant 0 : index
    %c0_20 = arith.constant 0 : index
    %29 = vector.load %arg4[%c0_18, %c0_19, %c0_20] : memref<1x2x256xf32, #tpu.memory_space<vmem>>, vector<1x2x256xf32>
    %30 = vector.shape_cast %29 : vector<1x2x256xf32> to vector<2x256xf32>
    %31 = vector.shape_cast %28 : vector<2x256xf32> to vector<1x2x256xf32>
    tpu.vector_store %arg4[%c0_18, %c0_19, %c0_20], %31 {strides = array<i32>} : memref<1x2x256xf32, #tpu.memory_space<vmem>>, vector<1x2x256xf32>,
    return
  }
  func.func @transform_0(%arg0: i32) -> (i32, i32, i32) {
    %c0_i32 = arith.constant 0 : i32
    %c0_i32_0 = arith.constant 0 : i32
    %c0_i32_1 = arith.constant 0 : i32
    return %arg0, %c0_i32, %c0_i32_0 : i32, i32, i32
  }
  func.func @transform_1(%arg0: i32) -> (i32, i32, i32) {
    %c0_i32 = arith.constant 0 : i32
    %c0_i32_0 = arith.constant 0 : i32
    %c0_i32_1 = arith.constant 0 : i32
    %c0_i32_2 = arith.constant 0 : i32
    return %c0_i32, %c0_i32_0, %c0_i32_1 : i32, i32, i32
  }
  func.func @transform_2(%arg0: i32) -> (i32, i32, i32) {
    %c0_i32 = arith.constant 0 : i32
    %c0_i32_0 = arith.constant 0 : i32
    %c0_i32_1 = arith.constant 0 : i32
    return %arg0, %c0_i32, %c0_i32_0 : i32, i32, i32
  }
  func.func @transform_3(%arg0: i32) -> (i32, i32, i32) {
    %c0_i32 = arith.constant 0 : i32
    %c0_i32_0 = arith.constant 0 : i32
    %c0_i32_1 = arith.constant 0 : i32
    return %arg0, %c0_i32, %c0_i32_0 : i32, i32, i32
  }
}

module attributes {stable_mosaic.version = 11 : i64} {
  func.func @_bn_relu_conv_stats_kernel(%arg0: i32, %arg1: memref<1x16x256xf32, #tpu.memory_space<vmem>>, %arg2: memref<2x256xf32, #tpu.memory_space<vmem>>, %arg3: memref<3x256x128xf32, #tpu.memory_space<vmem>>, %arg4: memref<1x16x128xf32, #tpu.memory_space<vmem>>, %arg5: memref<1x2x128xf32, #tpu.memory_space<vmem>>) attributes {dimension_semantics = [#tpu.dimension_semantics<parallel>], iteration_bounds = array<i64: 1>, scalar_prefetch = 0 : i64, scratch_operands = 0 : i64, tpu.core_type = #tpu.core_type<tc>, window_params = [{transform_indices = @transform_0, window_bounds = array<i64: 1, 16, 256>}, {pipeline_mode = #tpu.pipeline_mode<synchronous>, transform_indices = @transform_1, window_bounds = array<i64: 2, 256>}, {pipeline_mode = #tpu.pipeline_mode<synchronous>, transform_indices = @transform_2, window_bounds = array<i64: 3, 256, 128>}, {transform_indices = @transform_3, window_bounds = array<i64: 1, 16, 128>}, {transform_indices = @transform_4, window_bounds = array<i64: 1, 2, 128>}]} {
    %c0 = arith.constant 0 : index
    %c0_0 = arith.constant 0 : index
    %0 = vector.load %arg2[%c0, %c0_0] : memref<2x256xf32, #tpu.memory_space<vmem>>, vector<2x256xf32>
    %c0_1 = arith.constant 0 : index
    %c0_2 = arith.constant 0 : index
    %c0_3 = arith.constant 0 : index
    %1 = vector.load %arg1[%c0_1, %c0_2, %c0_3] : memref<1x16x256xf32, #tpu.memory_space<vmem>>, vector<1x16x256xf32>
    %2 = vector.shape_cast %1 : vector<1x16x256xf32> to vector<16x256xf32>
    %3 = vector.extract_strided_slice %0 {offsets = [0, 0], sizes = [1, 256], strides = [1, 1]} : vector<2x256xf32> to vector<1x256xf32>
    %4 = vector.broadcast %3 : vector<1x256xf32> to vector<16x256xf32>
    %5 = arith.mulf %2, %4 : vector<16x256xf32>
    %6 = vector.extract_strided_slice %0 {offsets = [1, 0], sizes = [1, 256], strides = [1, 1]} : vector<2x256xf32> to vector<1x256xf32>
    %7 = vector.broadcast %6 : vector<1x256xf32> to vector<16x256xf32>
    %8 = arith.addf %5, %7 : vector<16x256xf32>
    %cst = arith.constant 0.000000e+00 : f32
    %9 = vector.broadcast %cst : f32 to vector<16x256xf32>
    %10 = arith.maximumf %8, %9 : vector<16x256xf32>
    %cst_4 = arith.constant 0.000000e+00 : f32
    %11 = vector.broadcast %cst_4 : f32 to vector<1x256xf32>
    %12 = tpu.concatenate %11, %10, %11 in 0 : vector<1x256xf32>, vector<16x256xf32>, vector<1x256xf32> -> vector<18x256xf32>
    %cst_5 = arith.constant 0.000000e+00 : f32
    %13 = vector.broadcast %cst_5 : f32 to vector<16x128xf32>
    %14 = vector.extract_strided_slice %12 {offsets = [0, 0], sizes = [16, 256], strides = [1, 1]} : vector<18x256xf32> to vector<16x256xf32>
    %c0_6 = arith.constant 0 : index
    %c0_7 = arith.constant 0 : index
    %c0_8 = arith.constant 0 : index
    %15 = vector.load %arg3[%c0_6, %c0_7, %c0_8] : memref<3x256x128xf32, #tpu.memory_space<vmem>>, vector<1x256x128xf32>
    %16 = vector.shape_cast %15 : vector<1x256x128xf32> to vector<256x128xf32>
    %cst_9 = arith.constant dense<0.000000e+00> : vector<16x128xf32>
    %17 = tpu.matmul %14, %16, %cst_9 {dimension_numbers = #tpu.dot_dimension_numbers<[1], [0], [0], [1], [0, 0, 1, 1], [], []>} : vector<16x256xf32>, vector<256x128xf32>, vector<16x128xf32> -> vector<16x128xf32>
    %18 = arith.addf %13, %17 : vector<16x128xf32>
    %19 = vector.extract_strided_slice %12 {offsets = [1, 0], sizes = [16, 256], strides = [1, 1]} : vector<18x256xf32> to vector<16x256xf32>
    %c1 = arith.constant 1 : index
    %c0_10 = arith.constant 0 : index
    %c0_11 = arith.constant 0 : index
    %20 = vector.load %arg3[%c1, %c0_10, %c0_11] : memref<3x256x128xf32, #tpu.memory_space<vmem>>, vector<1x256x128xf32>
    %21 = vector.shape_cast %20 : vector<1x256x128xf32> to vector<256x128xf32>
    %cst_12 = arith.constant dense<0.000000e+00> : vector<16x128xf32>
    %22 = tpu.matmul %19, %21, %cst_12 {dimension_numbers = #tpu.dot_dimension_numbers<[1], [0], [0], [1], [0, 0, 1, 1], [], []>} : vector<16x256xf32>, vector<256x128xf32>, vector<16x128xf32> -> vector<16x128xf32>
    %23 = arith.addf %18, %22 : vector<16x128xf32>
    %24 = vector.extract_strided_slice %12 {offsets = [2, 0], sizes = [16, 256], strides = [1, 1]} : vector<18x256xf32> to vector<16x256xf32>
    %c2 = arith.constant 2 : index
    %c0_13 = arith.constant 0 : index
    %c0_14 = arith.constant 0 : index
    %25 = vector.load %arg3[%c2, %c0_13, %c0_14] : memref<3x256x128xf32, #tpu.memory_space<vmem>>, vector<1x256x128xf32>
    %26 = vector.shape_cast %25 : vector<1x256x128xf32> to vector<256x128xf32>
    %cst_15 = arith.constant dense<0.000000e+00> : vector<16x128xf32>
    %27 = tpu.matmul %24, %26, %cst_15 {dimension_numbers = #tpu.dot_dimension_numbers<[1], [0], [0], [1], [0, 0, 1, 1], [], []>} : vector<16x256xf32>, vector<256x128xf32>, vector<16x128xf32> -> vector<16x128xf32>
    %28 = arith.addf %23, %27 : vector<16x128xf32>
    %c0_16 = arith.constant 0 : index
    %c0_17 = arith.constant 0 : index
    %c0_18 = arith.constant 0 : index
    %29 = vector.load %arg4[%c0_16, %c0_17, %c0_18] : memref<1x16x128xf32, #tpu.memory_space<vmem>>, vector<1x16x128xf32>
    %30 = vector.shape_cast %29 : vector<1x16x128xf32> to vector<16x128xf32>
    %31 = vector.shape_cast %28 : vector<16x128xf32> to vector<1x16x128xf32>
    tpu.vector_store %arg4[%c0_16, %c0_17, %c0_18], %31 {strides = array<i32>} : memref<1x16x128xf32, #tpu.memory_space<vmem>>, vector<1x16x128xf32>,
    %cst_19 = arith.constant dense<0.000000e+00> : vector<128xf32>
    %32 = vector.multi_reduction <add>, %28, %cst_19 [0] : vector<16x128xf32> to vector<128xf32>
    %33 = vector.shape_cast %32 : vector<128xf32> to vector<1x128xf32>
    %34 = arith.mulf %28, %28 : vector<16x128xf32>
    %cst_20 = arith.constant dense<0.000000e+00> : vector<128xf32>
    %35 = vector.multi_reduction <add>, %34, %cst_20 [0] : vector<16x128xf32> to vector<128xf32>
    %36 = vector.shape_cast %35 : vector<128xf32> to vector<1x128xf32>
    %37 = tpu.concatenate %33, %36 in 0 : vector<1x128xf32>, vector<1x128xf32> -> vector<2x128xf32>
    %c0_21 = arith.constant 0 : index
    %c0_22 = arith.constant 0 : index
    %c0_23 = arith.constant 0 : index
    %38 = vector.load %arg5[%c0_21, %c0_22, %c0_23] : memref<1x2x128xf32, #tpu.memory_space<vmem>>, vector<1x2x128xf32>
    %39 = vector.shape_cast %38 : vector<1x2x128xf32> to vector<2x128xf32>
    %40 = vector.shape_cast %37 : vector<2x128xf32> to vector<1x2x128xf32>
    tpu.vector_store %arg5[%c0_21, %c0_22, %c0_23], %40 {strides = array<i32>} : memref<1x2x128xf32, #tpu.memory_space<vmem>>, vector<1x2x128xf32>,
    return
  }
  func.func @transform_0(%arg0: i32) -> (i32, i32, i32) {
    %c0_i32 = arith.constant 0 : i32
    %c0_i32_0 = arith.constant 0 : i32
    %c0_i32_1 = arith.constant 0 : i32
    return %arg0, %c0_i32, %c0_i32_0 : i32, i32, i32
  }
  func.func @transform_1(%arg0: i32) -> (i32, i32) {
    %c0_i32 = arith.constant 0 : i32
    %c0_i32_0 = arith.constant 0 : i32
    %c0_i32_1 = arith.constant 0 : i32
    return %c0_i32, %c0_i32_0 : i32, i32
  }
  func.func @transform_2(%arg0: i32) -> (i32, i32, i32) {
    %c0_i32 = arith.constant 0 : i32
    %c0_i32_0 = arith.constant 0 : i32
    %c0_i32_1 = arith.constant 0 : i32
    %c0_i32_2 = arith.constant 0 : i32
    return %c0_i32, %c0_i32_0, %c0_i32_1 : i32, i32, i32
  }
  func.func @transform_3(%arg0: i32) -> (i32, i32, i32) {
    %c0_i32 = arith.constant 0 : i32
    %c0_i32_0 = arith.constant 0 : i32
    %c0_i32_1 = arith.constant 0 : i32
    return %arg0, %c0_i32, %c0_i32_0 : i32, i32, i32
  }
  func.func @transform_4(%arg0: i32) -> (i32, i32, i32) {
    %c0_i32 = arith.constant 0 : i32
    %c0_i32_0 = arith.constant 0 : i32
    %c0_i32_1 = arith.constant 0 : i32
    return %arg0, %c0_i32, %c0_i32_0 : i32, i32, i32
  }
}

module attributes {stable_mosaic.version = 11 : i64} {
  func.func @_bn_relu_kernel(%arg0: i32, %arg1: memref<1x16x128xf32, #tpu.memory_space<vmem>>, %arg2: memref<2x128xf32, #tpu.memory_space<vmem>>, %arg3: memref<1x16x128xf32, #tpu.memory_space<vmem>>) attributes {dimension_semantics = [#tpu.dimension_semantics<parallel>], iteration_bounds = array<i64: 1>, scalar_prefetch = 0 : i64, scratch_operands = 0 : i64, tpu.core_type = #tpu.core_type<tc>, window_params = [{transform_indices = @transform_0, window_bounds = array<i64: 1, 16, 128>}, {pipeline_mode = #tpu.pipeline_mode<synchronous>, transform_indices = @transform_1, window_bounds = array<i64: 2, 128>}, {transform_indices = @transform_2, window_bounds = array<i64: 1, 16, 128>}]} {
    %c0 = arith.constant 0 : index
    %c0_0 = arith.constant 0 : index
    %0 = vector.load %arg2[%c0, %c0_0] : memref<2x128xf32, #tpu.memory_space<vmem>>, vector<2x128xf32>
    %c0_1 = arith.constant 0 : index
    %c0_2 = arith.constant 0 : index
    %c0_3 = arith.constant 0 : index
    %1 = vector.load %arg1[%c0_1, %c0_2, %c0_3] : memref<1x16x128xf32, #tpu.memory_space<vmem>>, vector<1x16x128xf32>
    %2 = vector.shape_cast %1 : vector<1x16x128xf32> to vector<16x128xf32>
    %3 = vector.extract_strided_slice %0 {offsets = [0, 0], sizes = [1, 128], strides = [1, 1]} : vector<2x128xf32> to vector<1x128xf32>
    %4 = vector.broadcast %3 : vector<1x128xf32> to vector<16x128xf32>
    %5 = arith.mulf %2, %4 : vector<16x128xf32>
    %6 = vector.extract_strided_slice %0 {offsets = [1, 0], sizes = [1, 128], strides = [1, 1]} : vector<2x128xf32> to vector<1x128xf32>
    %7 = vector.broadcast %6 : vector<1x128xf32> to vector<16x128xf32>
    %8 = arith.addf %5, %7 : vector<16x128xf32>
    %cst = arith.constant 0.000000e+00 : f32
    %9 = vector.broadcast %cst : f32 to vector<16x128xf32>
    %10 = arith.maximumf %8, %9 : vector<16x128xf32>
    %c0_4 = arith.constant 0 : index
    %c0_5 = arith.constant 0 : index
    %c0_6 = arith.constant 0 : index
    %11 = vector.load %arg3[%c0_4, %c0_5, %c0_6] : memref<1x16x128xf32, #tpu.memory_space<vmem>>, vector<1x16x128xf32>
    %12 = vector.shape_cast %11 : vector<1x16x128xf32> to vector<16x128xf32>
    %13 = vector.shape_cast %10 : vector<16x128xf32> to vector<1x16x128xf32>
    tpu.vector_store %arg3[%c0_4, %c0_5, %c0_6], %13 {strides = array<i32>} : memref<1x16x128xf32, #tpu.memory_space<vmem>>, vector<1x16x128xf32>,
    return
  }
  func.func @transform_0(%arg0: i32) -> (i32, i32, i32) {
    %c0_i32 = arith.constant 0 : i32
    %c0_i32_0 = arith.constant 0 : i32
    %c0_i32_1 = arith.constant 0 : i32
    return %arg0, %c0_i32, %c0_i32_0 : i32, i32, i32
  }
  func.func @transform_1(%arg0: i32) -> (i32, i32) {
    %c0_i32 = arith.constant 0 : i32
    %c0_i32_0 = arith.constant 0 : i32
    %c0_i32_1 = arith.constant 0 : i32
    return %c0_i32, %c0_i32_0 : i32, i32
  }
  func.func @transform_2(%arg0: i32) -> (i32, i32, i32) {
    %c0_i32 = arith.constant 0 : i32
    %c0_i32_0 = arith.constant 0 : i32
    %c0_i32_1 = arith.constant 0 : i32
    return %arg0, %c0_i32, %c0_i32_0 : i32, i32, i32
  }
}

</mosaic_0001>

<bundles_post_ra>
// kernel: squeeze.40
= control target key start
LH: loop header
LB: loop body
LE: loop exit
PB: predicated region body
PF: predicated region fallthrough
CT: control target
= control target key end

     0   :  { %s130_s8 = smov 120   ;;  %s131_s9 = smov 88   ;;  %vm7_vm0 = vcmask 64512   ;;  %s221_s0 = inlined_call_operand.vmem [shape: f32[256], index: 0, kind: input, shape index: {}]   ;;  %s222_s1 = inlined_call_operand.vmem [shape: f32[2,16,8], index: 1, kind: output, shape index: {}]  }
   0x1   :  { %v4_v0 = vld [vmem:[%s221_s0] sm:$0x3]  ;;  %s129_s0 = smov 104   ;;  %s132_s10 = smov 96  }
   0x2   :  { %5 = vst [vmem:[#allocation0] sm:$0x3] %v4_v0  ;;  %s133_s11 = smov 112   ;;  %s134_s12 = smov 80  }
   0x3   :  { %s135_s13 = smov 64   ;;  %s136_s14 = smov 72  }
   0x4   :  { %s137_s15 = smov 56   ;;  %s138_s16 = smov 40  }
   0x5   :  { %s139_s17 = smov 48   ;;  %s140_s18 = smov 32  }
   0x6   :  { %s141_s19 = smov 16   ;;  %s142_s20 = smov 24  }
   0x7   :  { %s143_s21 = smov 8  }
   0x9   :  { %v21_v1 = vld [vmem:[#allocation0] sm:$0x3]  }
   0xa   :  { %v9_v2 = vld [vmem:[#allocation0] sm:$0x3]   ;;  %22 = vrot.lane.b32.xlu1 %v21_v1, %s129_s0 }
   0xb   :  { %10 = vrot.lane.b32.xlu0 %v9_v2, %s130_s8  ;;  %v33_v3 = vld [vmem:[#allocation0] sm:$0x3]  }
   0xc   :  { %34 = vrot.lane.b32.xlu2 %v33_v3, %s131_s9  ;;  %v27_v4 = vld [vmem:[#allocation0] sm:$0x3]  }
   0xd   :  { %v15_v5 = vld [vmem:[#allocation0] sm:$0x3]  }
   0xe   :  { %v39_v6 = vld [vmem:[#allocation0] sm:$0x3]  }
   0xf   :  { %v51_v7 = vld [vmem:[#allocation0] sm:$0x3]  }
  0x10   :  { %v45_v8 = vld [vmem:[#allocation0] sm:$0x3]  }
  0x11   :  { %v57_v9 = vld [vmem:[#allocation0] sm:$0x3]  }
  0x12   :  { %28 = vrot.lane.b32.xlu1 %v27_v4, %s132_s10  ;;  %v69_v10 = vld [vmem:[#allocation0] sm:$0x3]  }
  0x13   :  { %16 = vrot.lane.b32.xlu0 %v15_v5, %s133_s11  ;;  %v63_v11 = vld [vmem:[#allocation0] sm:$0x3]  }
  0x14   :  { %40 = vrot.lane.b32.xlu2 %v39_v6, %s134_s12  ;;  %v75_v12 = vld [vmem:[#allocation0] sm:$0x3]  }
  0x15   :  { %v87_v13 = vld [vmem:[#allocation0] sm:$0x3]  }
  0x16   :  { %v81_v14 = vld [vmem:[#allocation0] sm:$0x3]  }
  0x17   :  { %v93_v15 = vld [vmem:[#allocation0] sm:$0x3]  }
  0x18   :  { %v6_v21 = vld [vmem:[#allocation0] sm:$0x3]  }
  0x19   :  { %8 = vst.msk [vmem:[%s222_s1] ss:$16 sm:$0x3] %vm7_vm0, %v6_v21  }
  0x1a   :  { %52 = vrot.lane.b32.xlu1 %v51_v7, %s135_s13 }
  0x1b   :  { %46 = vrot.lane.b32.xlu0 %v45_v8, %s136_s14 }
  0x1c   :  { %58 = vrot.lane.b32.xlu2 %v57_v9, %s137_s15 }
  0x22   :  { %70 = vrot.lane.b32.xlu1 %v69_v10, %s138_s16 }
  0x23   :  { %64 = vrot.lane.b32.xlu0 %v63_v11, %s139_s17 }
  0x24   :  { %76 = vrot.lane.b32.xlu2 %v75_v12, %s140_s18 }
  0x2a   :  { %88 = vrot.lane.b32.xlu1 %v87_v13, %s141_s19 }
  0x2b   :  { %82 = vrot.lane.b32.xlu0 %v81_v14, %s142_s20 }
  0x2c   :  { %94 = vrot.lane.b32.xlu2 %v93_v15, %s143_s21 }
  0x66   :  { %v35_v16 = vpop.permute.xlu2 %34  }
  0x67   :  { %103 = vst.msk [vmem:[%s222_s1 + $0x5] ss:$16 sm:$0x3] %vm7_vm0, %v35_v16  }
  0x6e   :  { %v41_v17 = vpop.permute.xlu2 %40  }
  0x6f   :  { %104 = vst.msk [vmem:[%s222_s1 + $0x6] ss:$16 sm:$0x3] %vm7_vm0, %v41_v17  }
  0x76   :  { %v59_v18 = vpop.permute.xlu2 %58  }
  0x77   :  { %107 = vst.msk [vmem:[%s222_s1 + $0x9] ss:$16 sm:$0x3] %vm7_vm0, %v59_v18  }
  0x7c   :  { %v23_v19 = vpop.permute.xlu1 %22  }
  0x7d   :  { %v11_v20 = vpop.permute.xlu0 %10   ;;  %101 = vst.msk [vmem:[%s222_s1 + $0x3] ss:$16 sm:$0x3] %vm7_vm0, %v23_v19  }
  0x7e   :  { %99 = vst.msk [vmem:[%s222_s1 + $0x1] ss:$16 sm:$0x3] %vm7_vm0, %v11_v20   ;;  %v77_v22 = vpop.permute.xlu2 %76  }
  0x7f   :  { %110 = vst.msk [vmem:[%s222_s1 + $0xc] ss:$16 sm:$0x3] %vm7_vm0, %v77_v22  }
  0x84   :  { %v29_v23 = vpop.permute.xlu1 %28  }
  0x85   :  { %v17_v24 = vpop.permute.xlu0 %16   ;;  %102 = vst.msk [vmem:[%s222_s1 + $0x4] ss:$16 sm:$0x3] %vm7_vm0, %v29_v23  }
  0x86   :  { %100 = vst.msk [vmem:[%s222_s1 + $0x2] ss:$16 sm:$0x3] %vm7_vm0, %v17_v24   ;;  %v95_v25 = vpop.permute.xlu2 %94  }
  0x87   :  { %113 = vst.msk [vmem:[%s222_s1 + $0xf] ss:$16 sm:$0x3] %vm7_vm0, %v95_v25  }
  0x8c   :  { %v53_v26 = vpop.permute.xlu1 %52  }
  0x8d   :  { %v47_v27 = vpop.permute.xlu0 %46   ;;  %106 = vst.msk [vmem:[%s222_s1 + $0x8] ss:$16 sm:$0x3] %vm7_vm0, %v53_v26  }
  0x8e   :  { %105 = vst.msk [vmem:[%s222_s1 + $0x7] ss:$16 sm:$0x3] %vm7_vm0, %v47_v27  }
  0x94   :  { %v71_v28 = vpop.permute.xlu1 %70  }
  0x95   :  { %v65_v29 = vpop.permute.xlu0 %64   ;;  %109 = vst.msk [vmem:[%s222_s1 + $0xb] ss:$16 sm:$0x3] %vm7_vm0, %v71_v28  }
  0x96   :  { %108 = vst.msk [vmem:[%s222_s1 + $0xa] ss:$16 sm:$0x3] %vm7_vm0, %v65_v29  }
  0x9c   :  { %v89_v30 = vpop.permute.xlu1 %88  }
  0x9d   :  { %v83_v31 = vpop.permute.xlu0 %82   ;;  %112 = vst.msk [vmem:[%s222_s1 + $0xe] ss:$16 sm:$0x3] %vm7_vm0, %v89_v30  }
  0x9e   :  { %111 = vst.msk [vmem:[%s222_s1 + $0xd] ss:$16 sm:$0x3] %vm7_vm0, %v83_v31  }

// kernel: tile.27
= control target key start
LH: loop header
LB: loop body
LE: loop exit
PB: predicated region body
PF: predicated region fallthrough
CT: control target
= control target key end

     0   :  { %s40_s0 = inlined_call_operand.vmem [shape: f32[8], index: 0, kind: input, shape index: {}]   ;;  %s41_s1 = inlined_call_operand.vmem [shape: f32[32,8], index: 1, kind: output, shape index: {}]  }
   0x1   :  { %v4_v0 = vld [vmem:[%s40_s0] ss:$0 sm:$0xff] }
   0x2   :  { %5 = vst [vmem:[%s41_s1] sm:$0xff] %v4_v0 }
   0x3   :  { %12 = vst [vmem:[%s41_s1 + $0x8] sm:$0xff] %v4_v0 }
   0x4   :  { %13 = vst [vmem:[%s41_s1 + $0x10] sm:$0xff] %v4_v0 }
   0x5   :  { %14 = vst [vmem:[%s41_s1 + $0x18] sm:$0xff] %v4_v0 }

// kernel: tile.29
= control target key start
LH: loop header
LB: loop body
LE: loop exit
PB: predicated region body
PF: predicated region fallthrough
CT: control target
= control target key end

     0   :  { %s7_s6 = smov 3  ;;  %s21_s9 = smov 3  ;;  %vm4_vm0 = vcmask 64512   ;;  %vm11_vm1 = vcmask 1048512   ;;  %vm18_vm2 = vcmask 982912   ;;  %vm25_vm3 = vcmask 917312   ;;  %s233_s0 = inlined_call_operand.vmem [shape: f32[32,8], index: 0, kind: input, shape index: {}]   ;;  %s234_s1 = inlined_call_operand.vmem [shape: f32[1,256], index: 1, kind: output, shape index: {}]  }
   0x1   :  { %v123_v0 = vld [vmem:[%s233_s0 + $0xf] ss:$16 sm:%s7_s6]   ;;  %s154_s10 = smov 120   ;;  %v125_v1 = vld [vmem:[%s233_s0 + $0xd] ss:$16 sm:%s21_s9]   ;;  %s155_s13 = smov 104  }
   0x2   :  { %9 = vrot.lane.b32.xlu0 %v123_v0, %s154_s10  ;;  %23 = vrot.lane.b32.xlu1 %v125_v1, %s155_s13  ;;  %s14_s14 = smov 3  ;;  %s28_s15 = smov 3  ;;  %vm32_vm4 = vcmask 851712   ;;  %vm39_vm5 = vcmask 786112   ;;  %vm46_vm6 = vcmask 720512   ;;  %vm53_vm7 = vcmask 654912  }
   0x3   :  { %v124_v2 = vld [vmem:[%s233_s0 + $0xe] ss:$16 sm:%s14_s14]   ;;  %v126_v3 = vld [vmem:[%s233_s0 + $0xc] ss:$16 sm:%s28_s15]   ;;  %s35_s20 = smov 3  ;;  %s156_s23 = smov 112  }
   0x4   :  { %v127_v4 = vld [vmem:[%s233_s0 + $0xb] ss:$16 sm:%s35_s20]   ;;  %s157_s24 = smov 88   ;;  %s158_s25 = smov 96   ;;  %vm60_vm8 = vcmask 589312   ;;  %vm67_vm9 = vcmask 523712  }
   0x5   :  { %37 = vrot.lane.b32.xlu2 %v127_v4, %s157_s24  ;;  %s49_s26 = smov 3  ;;  %s42_s27 = smov 3  ;;  %vm74_vm10 = vcmask 458112   ;;  %vm81_vm11 = vcmask 392512   ;;  %vm88_vm12 = vcmask 326912   ;;  %vm95_vm13 = vcmask 261312  }
   0x6   :  { %s56_s28 = smov 3  ;;  %v129_v5 = vld [vmem:[%s233_s0 + $0x9] ss:$16 sm:%s49_s26]   ;;  %v128_v6 = vld [vmem:[%s233_s0 + $0xa] ss:$16 sm:%s42_s27]   ;;  %s159_s6 = smov 72  }
   0x7   :  { %v130_v7 = vld [vmem:[%s233_s0 + $0x8] ss:$16 sm:%s56_s28]   ;;  %s160_s7 = smov 80   ;;  %s161_s8 = smov 64   ;;  %vm102_vm14 = vcmask 195712   ;;  %vm109_vm15 = vcmask 130112  }
   0x8   :  { %s70_s9 = smov 3  ;;  %s63_s10 = smov 3 }
   0x9   :  { %s77_s11 = smov 3  ;;  %v132_v8 = vld [vmem:[%s233_s0 + $0x6] ss:$16 sm:%s70_s9]   ;;  %v131_v9 = vld [vmem:[%s233_s0 + $0x7] ss:$16 sm:%s63_s10]   ;;  %s162_s18 = smov 48  }
   0xa   :  { %16 = vrot.lane.b32.xlu0 %v124_v2, %s156_s23  ;;  %30 = vrot.lane.b32.xlu1 %v126_v3, %s158_s25  ;;  %v133_v10 = vld [vmem:[%s233_s0 + $0x5] ss:$16 sm:%s77_s11]   ;;  %s163_s19 = smov 56   ;;  %s164_s20 = smov 40  }
   0xb   :  { %s91_s21 = smov 3  ;;  %s84_s22 = smov 3 }
   0xc   :  { %s98_s23 = smov 3  ;;  %v135_v11 = vld [vmem:[%s233_s0 + $0x3] ss:$16 sm:%s91_s21]   ;;  %v134_v12 = vld [vmem:[%s233_s0 + $0x4] ss:$16 sm:%s84_s22]   ;;  %s165_s30 = smov 24  }
   0xd   :  { %44 = vrot.lane.b32.xlu2 %v128_v6, %s160_s7  ;;  %v136_v13 = vld [vmem:[%s233_s0 + $0x2] ss:$16 sm:%s98_s23]   ;;  %s166_s2 = smov 32   ;;  %s167_s3 = smov 16  }
   0xe   :  { %s105_s4 = smov 3  ;;  %s168_s7 = smov 8  }
   0xf   :  { %v137_v14 = vld [vmem:[%s233_s0 + $0x1] ss:$16 sm:%s105_s4]  }
  0x12   :  { %51 = vrot.lane.b32.xlu0 %v129_v5, %s159_s6  ;;  %58 = vrot.lane.b32.xlu1 %v130_v7, %s161_s8  ;;  %s2_s8 = smov 3 }
  0x13   :  { %v3_v15 = vld [vmem:[%s233_s0] ss:$16 sm:%s2_s8]  }
  0x14   :  { %5 = vst.msk [vmem:[#allocation0] ss:$8 sm:$0x3] %vm4_vm0, %v3_v15  }
  0x15   :  { %65 = vrot.lane.b32.xlu2 %v131_v9, %s163_s19 }
  0x1a   :  { %72 = vrot.lane.b32.xlu0 %v132_v8, %s162_s18  ;;  %79 = vrot.lane.b32.xlu1 %v133_v10, %s164_s20 }
  0x1d   :  { %86 = vrot.lane.b32.xlu2 %v134_v12, %s166_s2 }
  0x22   :  { %93 = vrot.lane.b32.xlu0 %v135_v11, %s165_s30  ;;  %100 = vrot.lane.b32.xlu1 %v136_v13, %s167_s3 }
  0x25   :  { %107 = vrot.lane.b32.xlu2 %v137_v14, %s168_s7 }
  0x5f   :  { %v38_v16 = vpop.permute.xlu2 %37  }
  0x67   :  { %v45_v17 = vpop.permute.xlu2 %44  }
  0x6f   :  { %v66_v19 = vpop.permute.xlu2 %65  }
  0x74   :  { %v10_v18 = vpop.permute.xlu0 %9   ;;  %v24_v20 = vpop.permute.xlu1 %23  }
  0x75   :  { %12 = vst.msk [vmem:[#allocation0] ss:$8 sm:$0x3] %vm11_vm1, %v10_v18  }
  0x77   :  { %v87_v22 = vpop.permute.xlu2 %86  }
  0x7c   :  { %v17_v21 = vpop.permute.xlu0 %16   ;;  %v31_v23 = vpop.permute.xlu1 %30  }
  0x7d   :  { %19 = vst.msk [vmem:[#allocation0] ss:$8 sm:$0x3] %vm18_vm2, %v17_v21  }
  0x7e   :  { %26 = vst.msk [vmem:[#allocation0] ss:$8 sm:$0x3] %vm25_vm3, %v24_v20  }
  0x7f   :  { %33 = vst.msk [vmem:[#allocation0] ss:$8 sm:$0x3] %vm32_vm4, %v31_v23   ;;  %v108_v25 = vpop.permute.xlu2 %107  }
  0x80   :  { %40 = vst.msk [vmem:[#allocation0] ss:$8 sm:$0x3] %vm39_vm5, %v38_v16  }
  0x81   :  { %47 = vst.msk [vmem:[#allocation0] ss:$8 sm:$0x3] %vm46_vm6, %v45_v17  }
  0x84   :  { %v52_v24 = vpop.permute.xlu0 %51   ;;  %v59_v26 = vpop.permute.xlu1 %58  }
  0x85   :  { %54 = vst.msk [vmem:[#allocation0] ss:$8 sm:$0x3] %vm53_vm7, %v52_v24  }
  0x86   :  { %61 = vst.msk [vmem:[#allocation0] ss:$8 sm:$0x3] %vm60_vm8, %v59_v26  }
  0x87   :  { %68 = vst.msk [vmem:[#allocation0] ss:$8 sm:$0x3] %vm67_vm9, %v66_v19  }
  0x8c   :  { %v73_v27 = vpop.permute.xlu0 %72   ;;  %v80_v28 = vpop.permute.xlu1 %79  }
  0x8d   :  { %75 = vst.msk [vmem:[#allocation0] ss:$8 sm:$0x3] %vm74_vm10, %v73_v27  }
  0x8e   :  { %82 = vst.msk [vmem:[#allocation0] ss:$8 sm:$0x3] %vm81_vm11, %v80_v28  }
  0x8f   :  { %89 = vst.msk [vmem:[#allocation0] ss:$8 sm:$0x3] %vm88_vm12, %v87_v22  }
  0x94   :  { %v94_v29 = vpop.permute.xlu0 %93   ;;  %v101_v30 = vpop.permute.xlu1 %100  }
  0x95   :  { %96 = vst.msk [vmem:[#allocation0] ss:$8 sm:$0x3] %vm95_vm13, %v94_v29  }
  0x96   :  { %103 = vst.msk [vmem:[#allocation0] ss:$8 sm:$0x3] %vm102_vm14, %v101_v30  }
  0x97   :  { %110 = vst.msk [vmem:[#allocation0] ss:$8 sm:$0x3] %vm109_vm15, %v108_v25  }
  0x9e   :  { %v113_v31 = vld [vmem:[#allocation0] sm:$0x1]  ;;  %v118_v32 = vld [vmem:[#allocation0 + $0x8] sm:$0x1] }
  0x9f   :  { %116 = vst [vmem:[%s234_s1] sm:$0x1] %v113_v31 }
  0xa0   :  { %138 = vst [vmem:[%s234_s1 + $0x1] sm:$0x1] %v118_v32 }

// kernel: two_conv_block.3
= control target key start
LH: loop header
LB: loop body
LE: loop exit
PB: predicated region body
PF: predicated region fallthrough
CT: control target
= control target key end

     0   :  { %vm17_vm0 = vcmask 1040384   ;;  %vm93_vm1 = vcmask 1046528   ;;  %vm226_vm3 = vcmask 1045504   ;;  %vm325_vm4 = vcmask 1041408   ;;  %s784_s1 = inlined_call_operand.vmem [shape: f32[3,128,256], index: 1, kind: input, shape index: {}]   ;;  %s785_s0 = inlined_call_operand.vmem [shape: f32[1,16,128], index: 0, kind: input, shape index: {}]   ;;  %s786_s2 = inlined_call_operand.vmem [shape: f32[1,16,256], index: 2, kind: output, shape index: {0}]   ;;  %s787_s3 = inlined_call_operand.vmem [shape: f32[1,2,256], index: 3, kind: output, shape index: {1}]  }
   0x1   :  { %v367_v0 = vld [vmem:[%s784_s1 + $0x1f0] sm:$0xff]  ;;  %v368_v1 = vld [vmem:[%s784_s1 + $0x1f8] sm:$0xff]  ;;  %v365_v4 = vld [vmem:[%s784_s1 + $0x1e0] sm:$0xff] }
   0x2   :  { %v56_v2 = vld [vmem:[%s784_s1 + $0xf0] sm:$0xff]  ;;  %101 = vmatpush.msra.mxu0 %v367_v0  ;;  %124 = vmatpush.msra.mxu1 %v368_v1  ;;  %v57_v3 = vld [vmem:[%s784_s1 + $0xf8] sm:$0xff]  ;;  %v366_v5 = vld [vmem:[%s784_s1 + $0x1e8] sm:$0xff] }
   0x3   :  { %147 = vmatpush.msra.mxu2 %v56_v2  ;;  %170 = vmatpush.msra.mxu3 %v57_v3  ;;  %v54_v6 = vld [vmem:[%s784_s1 + $0xe0] sm:$0xff]  ;;  %v55_v7 = vld [vmem:[%s784_s1 + $0xe8] sm:$0xff]  ;;  %v363_v8 = vld [vmem:[%s784_s1 + $0x1d0] sm:$0xff] }
   0x4   :  { %102 = vmatpush.msra.mxu0 %v365_v4  ;;  %125 = vmatpush.msra.mxu1 %v366_v5  ;;  %v364_v9 = vld [vmem:[%s784_s1 + $0x1d8] sm:$0xff]  ;;  %v52_v10 = vld [vmem:[%s784_s1 + $0xd0] sm:$0xff]  ;;  %v361_v12 = vld [vmem:[%s784_s1 + $0x1c0] sm:$0xff] }
   0x5   :  { %v53_v11 = vld [vmem:[%s784_s1 + $0xd8] sm:$0xff]  ;;  %148 = vmatpush.msra.mxu2 %v54_v6  ;;  %171 = vmatpush.msra.mxu3 %v55_v7  ;;  %v362_v13 = vld [vmem:[%s784_s1 + $0x1c8] sm:$0xff]  ;;  %v50_v14 = vld [vmem:[%s784_s1 + $0xc0] sm:$0xff] }
   0x6   :  { %103 = vmatpush.msra.mxu0 %v363_v8  ;;  %126 = vmatpush.msra.mxu1 %v364_v9  ;;  %v51_v15 = vld [vmem:[%s784_s1 + $0xc8] sm:$0xff]  ;;  %v359_v16 = vld [vmem:[%s784_s1 + $0x1b0] sm:$0xff]  ;;  %v360_v17 = vld [vmem:[%s784_s1 + $0x1b8] sm:$0xff] }
   0x7   :  { %149 = vmatpush.msra.mxu2 %v52_v10  ;;  %172 = vmatpush.msra.mxu3 %v53_v11  ;;  %v48_v18 = vld [vmem:[%s784_s1 + $0xb0] sm:$0xff]  ;;  %v49_v19 = vld [vmem:[%s784_s1 + $0xb8] sm:$0xff]  ;;  %v357_v20 = vld [vmem:[%s784_s1 + $0x1a0] sm:$0xff] }
   0x8   :  { %104 = vmatpush.msra.mxu0 %v361_v12  ;;  %127 = vmatpush.msra.mxu1 %v362_v13  ;;  %v358_v21 = vld [vmem:[%s784_s1 + $0x1a8] sm:$0xff]  ;;  %v46_v22 = vld [vmem:[%s784_s1 + $0xa0] sm:$0xff]  ;;  %v355_v24 = vld [vmem:[%s784_s1 + $0x190] sm:$0xff] }
   0x9   :  { %150 = vmatpush.msra.mxu2 %v50_v14  ;;  %173 = vmatpush.msra.mxu3 %v51_v15  ;;  %v47_v23 = vld [vmem:[%s784_s1 + $0xa8] sm:$0xff]  ;;  %v356_v25 = vld [vmem:[%s784_s1 + $0x198] sm:$0xff]  ;;  %v44_v26 = vld [vmem:[%s784_s1 + $0x90] sm:$0xff] }
   0xa   :  { %105 = vmatpush.msra.mxu0 %v359_v16  ;;  %128 = vmatpush.msra.mxu1 %v360_v17  ;;  %v45_v27 = vld [vmem:[%s784_s1 + $0x98] sm:$0xff]  ;;  %v353_v28 = vld [vmem:[%s784_s1 + $0x180] sm:$0xff]  ;;  %v354_v29 = vld [vmem:[%s784_s1 + $0x188] sm:$0xff] }
   0xb   :  { %151 = vmatpush.msra.mxu2 %v48_v18  ;;  %174 = vmatpush.msra.mxu3 %v49_v19  ;;  %v42_v30 = vld [vmem:[%s784_s1 + $0x80] sm:$0xff]  ;;  %v43_v31 = vld [vmem:[%s784_s1 + $0x88] sm:$0xff]  ;;  %v351_v32 = vld [vmem:[%s784_s1 + $0x170] sm:$0xff] }
   0xc   :  { %106 = vmatpush.msra.mxu0 %v357_v20  ;;  %129 = vmatpush.msra.mxu1 %v358_v21  ;;  %v352_v33 = vld [vmem:[%s784_s1 + $0x178] sm:$0xff]  ;;  %v40_v34 = vld [vmem:[%s784_s1 + $0x70] sm:$0xff]  ;;  %v349_v36 = vld [vmem:[%s784_s1 + $0x160] sm:$0xff] }
   0xd   :  { %152 = vmatpush.msra.mxu2 %v46_v22  ;;  %175 = vmatpush.msra.mxu3 %v47_v23  ;;  %v41_v35 = vld [vmem:[%s784_s1 + $0x78] sm:$0xff]  ;;  %v350_v37 = vld [vmem:[%s784_s1 + $0x168] sm:$0xff]  ;;  %v38_v38 = vld [vmem:[%s784_s1 + $0x60] sm:$0xff] }
   0xe   :  { %107 = vmatpush.msra.mxu0 %v355_v24  ;;  %130 = vmatpush.msra.mxu1 %v356_v25  ;;  %v39_v39 = vld [vmem:[%s784_s1 + $0x68] sm:$0xff]  ;;  %v347_v40 = vld [vmem:[%s784_s1 + $0x150] sm:$0xff]  ;;  %v348_v41 = vld [vmem:[%s784_s1 + $0x158] sm:$0xff] }
   0xf   :  { %153 = vmatpush.msra.mxu2 %v44_v26  ;;  %176 = vmatpush.msra.mxu3 %v45_v27  ;;  %v36_v42 = vld [vmem:[%s784_s1 + $0x50] sm:$0xff]  ;;  %v37_v43 = vld [vmem:[%s784_s1 + $0x58] sm:$0xff]  ;;  %v345_v44 = vld [vmem:[%s784_s1 + $0x140] sm:$0xff] }
  0x10   :  { %108 = vmatpush.msra.mxu0 %v353_v28  ;;  %131 = vmatpush.msra.mxu1 %v354_v29  ;;  %v346_v45 = vld [vmem:[%s784_s1 + $0x148] sm:$0xff]  ;;  %v34_v46 = vld [vmem:[%s784_s1 + $0x40] sm:$0xff]  ;;  %v343_v48 = vld [vmem:[%s784_s1 + $0x130] sm:$0xff] }
  0x11   :  { %154 = vmatpush.msra.mxu2 %v42_v30  ;;  %177 = vmatpush.msra.mxu3 %v43_v31  ;;  %v35_v47 = vld [vmem:[%s784_s1 + $0x48] sm:$0xff]  ;;  %v344_v49 = vld [vmem:[%s784_s1 + $0x138] sm:$0xff]  ;;  %v32_v50 = vld [vmem:[%s784_s1 + $0x30] sm:$0xff] }
  0x12   :  { %109 = vmatpush.msra.mxu0 %v351_v32  ;;  %132 = vmatpush.msra.mxu1 %v352_v33  ;;  %v33_v51 = vld [vmem:[%s784_s1 + $0x38] sm:$0xff]  ;;  %v341_v52 = vld [vmem:[%s784_s1 + $0x120] sm:$0xff]  ;;  %v342_v53 = vld [vmem:[%s784_s1 + $0x128] sm:$0xff] }
  0x13   :  { %155 = vmatpush.msra.mxu2 %v40_v34  ;;  %178 = vmatpush.msra.mxu3 %v41_v35  ;;  %v30_v54 = vld [vmem:[%s784_s1 + $0x20] sm:$0xff]  ;;  %v31_v55 = vld [vmem:[%s784_s1 + $0x28] sm:$0xff]  ;;  %v339_v56 = vld [vmem:[%s784_s1 + $0x110] sm:$0xff] }
  0x14   :  { %110 = vmatpush.msra.mxu0 %v349_v36  ;;  %133 = vmatpush.msra.mxu1 %v350_v37  ;;  %v340_v57 = vld [vmem:[%s784_s1 + $0x118] sm:$0xff]  ;;  %v28_v58 = vld [vmem:[%s784_s1 + $0x10] sm:$0xff]  ;;  %v337_v60 = vld [vmem:[%s784_s1 + $0x100] sm:$0xff] }
  0x15   :  { %156 = vmatpush.msra.mxu2 %v38_v38  ;;  %179 = vmatpush.msra.mxu3 %v39_v39  ;;  %v29_v59 = vld [vmem:[%s784_s1 + $0x18] sm:$0xff]  ;;  %v338_v61 = vld [vmem:[%s784_s1 + $0x108] sm:$0xff]  ;;  %v26_v62 = vld [vmem:[%s784_s1] sm:$0xff] }
  0x16   :  { %111 = vmatpush.msra.mxu0 %v347_v40  ;;  %134 = vmatpush.msra.mxu1 %v348_v41  ;;  %v27_v63 = vld [vmem:[%s784_s1 + $0x8] sm:$0xff]  ;;  %v403_v0 = vld [vmem:[%s784_s1 + $0x2f0] sm:$0xff]  ;;  %v404_v1 = vld [vmem:[%s784_s1 + $0x2f8] sm:$0xff] }
  0x17   :  { %157 = vmatpush.msra.mxu2 %v36_v42  ;;  %180 = vmatpush.msra.mxu3 %v37_v43  ;;  %v401_v2 = vld [vmem:[%s784_s1 + $0x2e0] sm:$0xff]  ;;  %v14_v4 = vld [vmem:[%s785_s0 + $0x8] sm:$0xff]  ;;  %v399_v6 = vld [vmem:[%s784_s1 + $0x2d0] sm:$0xff] }
  0x18   :  { %112 = vmatpush.msra.mxu0 %v345_v44  ;;  %135 = vmatpush.msra.mxu1 %v346_v45  ;;  %v13_v3 = vld [vmem:[%s785_s0] sm:$0xff]  ;;  %v402_v5 = vld [vmem:[%s784_s1 + $0x2e8] sm:$0xff]  ;;  %v400_v7 = vld [vmem:[%s784_s1 + $0x2d8] sm:$0xff]  ;;  %v19_v9 = vrot.slane %v14_v4, 7 }
  0x19   :  { %158 = vmatpush.msra.mxu2 %v34_v46  ;;  %181 = vmatpush.msra.mxu3 %v35_v47  ;;  %v18_v8 = vrot.slane %v13_v3, 7  ;;  %v397_v10 = vld [vmem:[%s784_s1 + $0x2c0] sm:$0xff]  ;;  %v398_v11 = vld [vmem:[%s784_s1 + $0x2c8] sm:$0xff]  ;;  %v395_v12 = vld [vmem:[%s784_s1 + $0x2b0] sm:$0xff] }
  0x1a   :  { %113 = vmatpush.msra.mxu0 %v343_v48  ;;  %136 = vmatpush.msra.mxu1 %v344_v49  ;;  %v396_v13 = vld [vmem:[%s784_s1 + $0x2b8] sm:$0xff]  ;;  %v393_v16 = vld [vmem:[%s784_s1 + $0x2a0] sm:$0xff]  ;;  %v394_v17 = vld [vmem:[%s784_s1 + $0x2a8] sm:$0xff]  ;;  %v25_v27 = vsel %vm17_vm0, %v19_v9, 0.0 }
  0x1b   :  { %159 = vmatpush.msra.mxu2 %v32_v50  ;;  %182 = vmatpush.msra.mxu3 %v33_v51  ;;  %v686_v14 = vsel %vm17_vm0, %v18_v8, %v19_v9  ;;  %v689_v15 = vsel %vm17_vm0, 0.0, %v18_v8  ;;  %v391_v18 = vld [vmem:[%s784_s1 + $0x290] sm:$0xff]  ;;  %v392_v21 = vld [vmem:[%s784_s1 + $0x298] sm:$0xff]  ;;  %v389_v22 = vld [vmem:[%s784_s1 + $0x280] sm:$0xff]  ;;  %v97_v31 = vrot.slane %v25_v27, 1  ;;  %v230_v43 = vrot.slane %v25_v27, 2 }
  0x1c   :  { %114 = vmatpush.msra.mxu0 %v341_v52  ;;  %137 = vmatpush.msra.mxu1 %v342_v53  ;;  %v94_v19 = vrot.slane %v689_v15, 1  ;;  %v95_v20 = vrot.slane %v686_v14, 1  ;;  %v390_v23 = vld [vmem:[%s784_s1 + $0x288] sm:$0xff]  ;;  %vm369_vm2 = vmneg %vm17_vm0  ;;  %v387_v25 = vld [vmem:[%s784_s1 + $0x270] sm:$0xff]  ;;  %v227_v41 = vrot.slane %v689_v15, 2  ;;  %v228_v42 = vrot.slane %v686_v14, 2 }
  0x1d   :  { %160 = vmatpush.msra.mxu2 %v30_v54  ;;  %183 = vmatpush.msra.mxu3 %v31_v55  ;;  %v388_v26 = vld [vmem:[%s784_s1 + $0x278] sm:$0xff]  ;;  %v385_v28 = vld [vmem:[%s784_s1 + $0x260] sm:$0xff]  ;;  %v386_v29 = vld [vmem:[%s784_s1 + $0x268] sm:$0xff] }
  0x1e   :  { %115 = vmatpush.msra.mxu0 %v339_v56  ;;  %138 = vmatpush.msra.mxu1 %v340_v57  ;;  %v96_v24 = vsel %vm93_vm1, %v94_v19, %v95_v20  ;;  %v383_v30 = vld [vmem:[%s784_s1 + $0x250] sm:$0xff]  ;;  %v384_v32 = vld [vmem:[%s784_s1 + $0x258] sm:$0xff]  ;;  %v381_v33 = vld [vmem:[%s784_s1 + $0x240] sm:$0xff]  ;;  %v98_v35 = vsel %vm93_vm1, %v95_v20, %v97_v31  ;;  %v229_v47 = vsel %vm226_vm3, %v227_v41, %v228_v42 }
  0x1f   :  { %161 = vmatpush.msra.mxu2 %v28_v58  ;;  %184 = vmatpush.msra.mxu3 %v29_v59  ;;  %v382_v34 = vld [vmem:[%s784_s1 + $0x248] sm:$0xff]  ;;  %v379_v36 = vld [vmem:[%s784_s1 + $0x230] sm:$0xff]  ;;  %v380_v37 = vld [vmem:[%s784_s1 + $0x238] sm:$0xff]  ;;  %v231_v48 = vsel %vm226_vm3, %v228_v42, %v230_v43 }
  0x20   :  { %116 = vmatpush.msra.mxu0 %v337_v60  ;;  %139 = vmatpush.msra.mxu1 %v338_v61  ;;  %v377_v38 = vld [vmem:[%s784_s1 + $0x220] sm:$0xff]  ;;  %v378_v39 = vld [vmem:[%s784_s1 + $0x228] sm:$0xff]  ;;  %v375_v40 = vld [vmem:[%s784_s1 + $0x210] sm:$0xff] }
  0x21   :  { %162 = vmatpush.msra.mxu2 %v26_v62  ;;  %185 = vmatpush.msra.mxu3 %v27_v63  ;;  %v376_v44 = vld [vmem:[%s784_s1 + $0x218] sm:$0xff]  ;;  %v373_v45 = vld [vmem:[%s784_s1 + $0x200] sm:$0xff]  ;;  %v374_v46 = vld [vmem:[%s784_s1 + $0x208] sm:$0xff] }
  0x22   :  { %234 = vmatpush.msrb.mxu0 %v403_v0  ;;  %257 = vmatpush.msrb.mxu1 %v404_v1 }
  0x23   :  { %405 = vmatpush.msrb.mxu2 %v403_v0  ;;  %421 = vmatpush.msrb.mxu3 %v404_v1 }
  0x24   :  { %235 = vmatpush.msrb.mxu0 %v401_v2  ;;  %258 = vmatpush.msrb.mxu1 %v402_v5 }
  0x25   :  { %406 = vmatpush.msrb.mxu2 %v401_v2  ;;  %422 = vmatpush.msrb.mxu3 %v402_v5 }
  0x26   :  { %236 = vmatpush.msrb.mxu0 %v399_v6  ;;  %259 = vmatpush.msrb.mxu1 %v400_v7 }
  0x27   :  { %407 = vmatpush.msrb.mxu2 %v399_v6  ;;  %423 = vmatpush.msrb.mxu3 %v400_v7 }
  0x28   :  { %237 = vmatpush.msrb.mxu0 %v397_v10  ;;  %260 = vmatpush.msrb.mxu1 %v398_v11 }
  0x29   :  { %408 = vmatpush.msrb.mxu2 %v397_v10  ;;  %424 = vmatpush.msrb.mxu3 %v398_v11 }
  0x2a   :  { %238 = vmatpush.msrb.mxu0 %v395_v12  ;;  %261 = vmatpush.msrb.mxu1 %v396_v13 }
  0x2b   :  { %409 = vmatpush.msrb.mxu2 %v395_v12  ;;  %425 = vmatpush.msrb.mxu3 %v396_v13 }
  0x2c   :  { %239 = vmatpush.msrb.mxu0 %v393_v16  ;;  %262 = vmatpush.msrb.mxu1 %v394_v17 }
  0x2d   :  { %410 = vmatpush.msrb.mxu2 %v393_v16  ;;  %426 = vmatpush.msrb.mxu3 %v394_v17 }
  0x2e   :  { %240 = vmatpush.msrb.mxu0 %v391_v18  ;;  %263 = vmatpush.msrb.mxu1 %v392_v21 }
  0x2f   :  { %411 = vmatpush.msrb.mxu2 %v391_v18  ;;  %427 = vmatpush.msrb.mxu3 %v392_v21 }
  0x30   :  { %241 = vmatpush.msrb.mxu0 %v389_v22  ;;  %264 = vmatpush.msrb.mxu1 %v390_v23 }
  0x31   :  { %412 = vmatpush.msrb.mxu2 %v389_v22  ;;  %428 = vmatpush.msrb.mxu3 %v390_v23 }
  0x32   :  { %117 = vmatmul.f32.vlgmr.msra.gmra.mxu0 %v96_v24  ;;  %140 = vmatmul.f32.vlgmr.msra.gmra.mxu1 %v96_v24 }
  0x33   :  { %370 = vmatmul.msk.f32.vlgmr.msra.gmra.mxu2 %vm369_vm2, %v18_v8  ;;  %372 = vmatmul.msk.f32.vlgmr.msra.gmra.mxu3 %vm369_vm2, %v18_v8 }
  0x34   :  { %242 = vmatpush.msrb.mxu0 %v387_v25  ;;  %413 = vmatpush.msrb.mxu2 %v387_v25 }
  0x35   :  { %265 = vmatpush.msrb.mxu1 %v388_v26  ;;  %429 = vmatpush.msrb.mxu3 %v388_v26 }
  0x36   :  { %243 = vmatpush.msrb.mxu0 %v385_v28  ;;  %414 = vmatpush.msrb.mxu2 %v385_v28 }
  0x37   :  { %266 = vmatpush.msrb.mxu1 %v386_v29  ;;  %430 = vmatpush.msrb.mxu3 %v386_v29 }
  0x38   :  { %244 = vmatpush.msrb.mxu0 %v383_v30  ;;  %415 = vmatpush.msrb.mxu2 %v383_v30 }
  0x39   :  { %267 = vmatpush.msrb.mxu1 %v384_v32  ;;  %431 = vmatpush.msrb.mxu3 %v384_v32 }
  0x3a   :  { %245 = vmatpush.msrb.mxu0 %v381_v33  ;;  %416 = vmatpush.msrb.mxu2 %v381_v33 }
  0x3b   :  { %268 = vmatpush.msrb.mxu1 %v382_v34  ;;  %432 = vmatpush.msrb.mxu3 %v382_v34 }
  0x3c   :  { %120 = vmatmul.f32.gmra.mxu0 %v98_v35  ;;  %143 = vmatmul.f32.gmra.mxu1 %v98_v35 }
  0x3d   :  { %166 = vmatmul.f32.gmra.mxu2 %v686_v14  ;;  %189 = vmatmul.f32.gmra.mxu3 %v686_v14 }
  0x3e   :  { %246 = vmatpush.msrb.mxu0 %v379_v36  ;;  %417 = vmatpush.msrb.mxu2 %v379_v36 }
  0x3f   :  { %269 = vmatpush.msrb.mxu1 %v380_v37  ;;  %433 = vmatpush.msrb.mxu3 %v380_v37 }
  0x40   :  { %247 = vmatpush.msrb.mxu0 %v377_v38  ;;  %418 = vmatpush.msrb.mxu2 %v377_v38 }
  0x41   :  { %270 = vmatpush.msrb.mxu1 %v378_v39  ;;  %434 = vmatpush.msrb.mxu3 %v378_v39 }
  0x42   :  { %248 = vmatpush.msrb.mxu0 %v375_v40  ;;  %419 = vmatpush.msrb.mxu2 %v375_v40 }
  0x43   :  { %271 = vmatpush.msrb.mxu1 %v376_v44  ;;  %435 = vmatpush.msrb.mxu3 %v376_v44 }
  0x44   :  { %249 = vmatpush.msrb.mxu0 %v373_v45  ;;  %420 = vmatpush.msrb.mxu2 %v373_v45 }
  0x45   :  { %272 = vmatpush.msrb.mxu1 %v374_v46  ;;  %436 = vmatpush.msrb.mxu3 %v374_v46 }
  0x46   :  { %250 = vmatmul.f32.vlgmr.msrb.gmra.mxu0 %v229_v47  ;;  %253 = vmatmul.f32.vlgmr.msrb.gmra.mxu2 %v231_v48 }
  0x47   :  { %273 = vmatmul.f32.vlgmr.msrb.gmra.mxu1 %v229_v47  ;;  %276 = vmatmul.f32.vlgmr.msrb.gmra.mxu3 %v231_v48 }
  0xaf   :  { %v118_v49 = vpop.f32.mrf.mxu0  ;;  %v141_v50 = vpop.f32.mrf.mxu1 }
  0xb6   :  { %v164_v51 = vpop.f32.mrf.mxu2  ;;  %v187_v52 = vpop.f32.mrf.mxu3 }
  0xb7   :  { %v165_v57 = vadd.f32 %v164_v51, %v118_v49  ;;  %v188_v58 = vadd.f32 %v187_v52, %v141_v50 }
  0xb9   :  { %v121_v53 = vpop.f32.mrf.mxu0  ;;  %v144_v54 = vpop.f32.mrf.mxu1 }
  0xc0   :  { %v167_v55 = vpop.f32.mrf.mxu2  ;;  %v190_v56 = vpop.f32.mrf.mxu3 }
  0xc1   :  { %v168_v63 = vadd.f32 %v167_v55, %v121_v53  ;;  %v191_v0 = vadd.f32 %v190_v56, %v144_v54 }
  0xc3   :  { %v251_v59 = vpop.f32.mrf.mxu0 }
  0xc4   :  { %v280_v60 = vadd.f32 %v251_v59, %v165_v57  ;;  %v274_v61 = vpop.f32.mrf.mxu1 }
  0xc5   :  { %v281_v62 = vadd.f32 %v274_v61, %v188_v58 }
  0xc6   :  { %284 = vst [vmem:[%s786_s2] sm:$0xff] %v280_v60  ;;  %v302_v5 = vmul.f32 %v280_v60, %v280_v60 }
  0xc7   :  { %285 = vst [vmem:[%s786_s2 + $0x8] sm:$0xff] %v281_v62  ;;  %v303_v8 = vmul.f32 %v281_v62, %v281_v62 }
  0xc9   :  { %v254_v1 = vpop.f32.mrf.mxu2 }
  0xca   :  { %v282_v2 = vadd.f32 %v254_v1, %v168_v63  ;;  %v277_v3 = vpop.f32.mrf.mxu3 }
  0xcb   :  { %v283_v4 = vadd.f32 %v277_v3, %v191_v0 }
  0xcc   :  { %286 = vst [vmem:[%s786_s2 + $0x10] sm:$0xff] %v282_v2  ;;  %v288_v6 = vadd.f32 %v282_v2, %v280_v60  ;;  %v304_v7 = vmul.f32 %v282_v2, %v282_v2 }
  0xcd   :  { %287 = vst [vmem:[%s786_s2 + $0x18] sm:$0xff] %v283_v4  ;;  %v295_v9 = vadd.f32 %v283_v4, %v281_v62  ;;  %v305_v10 = vmul.f32 %v283_v4, %v283_v4 }
  0xce   :  { %v289_v11 = vrot.slane %v288_v6, 4  ;;  %v306_v12 = vadd.f32 %v304_v7, %v302_v5 }
  0xcf   :  { %v296_v13 = vrot.slane %v295_v9, 4  ;;  %v313_v14 = vadd.f32 %v305_v10, %v303_v8 }
  0xd0   :  { %v290_v15 = vadd.f32 %v289_v11, %v288_v6  ;;  %v307_v16 = vrot.slane %v306_v12, 4 }
  0xd1   :  { %v297_v17 = vadd.f32 %v296_v13, %v295_v9  ;;  %v314_v18 = vrot.slane %v313_v14, 4 }
  0xd2   :  { %v291_v19 = vrot.slane %v290_v15, 2  ;;  %v308_v20 = vadd.f32 %v307_v16, %v306_v12 }
  0xd3   :  { %v298_v21 = vrot.slane %v297_v17, 2  ;;  %v315_v22 = vadd.f32 %v314_v18, %v313_v14 }
  0xd4   :  { %v309_v23 = vrot.slane %v308_v20, 2  ;;  %v292_v24 = vadd.f32 %v291_v19, %v290_v15 }
  0xd5   :  { %v299_v25 = vadd.f32 %v298_v21, %v297_v17  ;;  %v316_v26 = vrot.slane %v315_v22, 2 }
  0xd6   :  { %v310_v27 = vadd.f32 %v309_v23, %v308_v20  ;;  %v293_v31 = vrot.slane %v292_v24, 1 }
  0xd7   :  { %v300_v28 = vrot.slane %v299_v25, 1  ;;  %v317_v29 = vadd.f32 %v316_v26, %v315_v22 }
  0xd8   :  { %v311_v30 = vrot.slane %v310_v27, 1  ;;  %v294_v36 = vadd.f32 %v293_v31, %v292_v24 }
  0xd9   :  { %v318_v32 = vrot.slane %v317_v29, 1  ;;  %v301_v34 = vadd.f32 %v300_v28, %v299_v25 }
  0xda   :  { %v312_v33 = vadd.f32 %v311_v30, %v310_v27 }
  0xdb   :  { %v319_v35 = vadd.f32 %v318_v32, %v317_v29 }
  0xdc   :  { %v320_v39 = vsel %vm17_vm0, %v294_v36, %v312_v33 }
  0xdd   :  { %v321_v37 = vsel %vm17_vm0, %v301_v34, %v319_v35 }
  0xde   :  { %v324_v38 = vrot.slane %v321_v37, 6 }
  0xe0   :  { %v326_v40 = vsel %vm325_vm4, %v320_v39, %v324_v38 }
  0xe1   :  { %328 = vst [vmem:[%s787_s3] sm:$0xf] %v326_v40 }

// kernel: squeeze.42
= control target key start
LH: loop header
LB: loop body
LE: loop exit
PB: predicated region body
PF: predicated region fallthrough
CT: control target
= control target key end

     0   :  { %s258_s8 = smov 116   ;;  %s259_s9 = smov 108   ;;  %vm7_vm0 = vcmask 31744   ;;  %s429_s0 = inlined_call_operand.vmem [shape: f32[128], index: 0, kind: input, shape index: {}]   ;;  %s430_s1 = inlined_call_operand.vmem [shape: f32[2,16,4], index: 1, kind: output, shape index: {}]  }
   0x1   :  { %v4_v0 = vld [vmem:[%s429_s0] sm:$0x1]  ;;  %s257_s0 = smov 124   ;;  %s260_s10 = smov 120  }
   0x2   :  { %5 = vst [vmem:[#allocation0] sm:$0x1] %v4_v0  ;;  %s261_s11 = smov 112   ;;  %s262_s12 = smov 104  }
   0x3   :  { %s263_s13 = smov 100   ;;  %s264_s14 = smov 96  }
   0x4   :  { %s265_s15 = smov 92   ;;  %s266_s16 = smov 88  }
   0x5   :  { %s267_s17 = smov 84   ;;  %s268_s18 = smov 80  }
   0x6   :  { %s269_s19 = smov 76   ;;  %s270_s20 = smov 72  }
   0x7   :  { %s271_s21 = smov 68   ;;  %s272_s22 = smov 64  }
   0x8   :  { %s273_s23 = smov 60   ;;  %s274_s24 = smov 56  }
   0x9   :  { %v9_v1 = vld [vmem:[#allocation0] sm:$0x1]   ;;  %s275_s25 = smov 52   ;;  %s276_s26 = smov 48  }
   0xa   :  { %v21_v2 = vld [vmem:[#allocation0] sm:$0x1]   ;;  %10 = vrot.lane.b32.xlu0 %v9_v1, %s257_s0  ;;  %s277_s27 = smov 44   ;;  %s278_s28 = smov 40  }
   0xb   :  { %22 = vrot.lane.b32.xlu1 %v21_v2, %s258_s8  ;;  %v33_v3 = vld [vmem:[#allocation0] sm:$0x1]   ;;  %s279_s29 = smov 36   ;;  %s280_s30 = smov 32  }
   0xc   :  { %34 = vrot.lane.b32.xlu2 %v33_v3, %s259_s9  ;;  %v15_v4 = vld [vmem:[#allocation0] sm:$0x1]   ;;  %s281_s2 = smov 28   ;;  %s282_s3 = smov 24  }
   0xd   :  { %v27_v5 = vld [vmem:[#allocation0] sm:$0x1]   ;;  %s283_s4 = smov 20   ;;  %s284_s5 = smov 16  }
   0xe   :  { %v39_v6 = vld [vmem:[#allocation0] sm:$0x1]   ;;  %s285_s6 = smov 12   ;;  %s286_s7 = smov 8  }
   0xf   :  { %v45_v7 = vld [vmem:[#allocation0] sm:$0x1]   ;;  %s287_s0 = smov 4  }
  0x10   :  { %v51_v8 = vld [vmem:[#allocation0] sm:$0x1]  }
  0x11   :  { %v57_v9 = vld [vmem:[#allocation0] sm:$0x1]  }
  0x12   :  { %16 = vrot.lane.b32.xlu0 %v15_v4, %s260_s10  ;;  %v63_v10 = vld [vmem:[#allocation0] sm:$0x1]  }
  0x13   :  { %28 = vrot.lane.b32.xlu1 %v27_v5, %s261_s11  ;;  %v69_v11 = vld [vmem:[#allocation0] sm:$0x1]  }
  0x14   :  { %40 = vrot.lane.b32.xlu2 %v39_v6, %s262_s12  ;;  %v75_v12 = vld [vmem:[#allocation0] sm:$0x1]  }
  0x15   :  { %v81_v13 = vld [vmem:[#allocation0] sm:$0x1]  }
  0x16   :  { %v87_v14 = vld [vmem:[#allocation0] sm:$0x1]  }
  0x17   :  { %v93_v15 = vld [vmem:[#allocation0] sm:$0x1]  }
  0x18   :  { %v99_v16 = vld [vmem:[#allocation0] sm:$0x1]  }
  0x19   :  { %v105_v17 = vld [vmem:[#allocation0] sm:$0x1]  }
  0x1a   :  { %46 = vrot.lane.b32.xlu0 %v45_v7, %s263_s13  ;;  %v111_v18 = vld [vmem:[#allocation0] sm:$0x1]  }
  0x1b   :  { %52 = vrot.lane.b32.xlu1 %v51_v8, %s264_s14  ;;  %v117_v19 = vld [vmem:[#allocation0] sm:$0x1]  }
  0x1c   :  { %58 = vrot.lane.b32.xlu2 %v57_v9, %s265_s15  ;;  %v123_v20 = vld [vmem:[#allocation0] sm:$0x1]  }
  0x1d   :  { %v129_v21 = vld [vmem:[#allocation0] sm:$0x1]  }
  0x1e   :  { %v135_v22 = vld [vmem:[#allocation0] sm:$0x1]  }
  0x1f   :  { %v141_v23 = vld [vmem:[#allocation0] sm:$0x1]  }
  0x20   :  { %v147_v24 = vld [vmem:[#allocation0] sm:$0x1]  }
  0x21   :  { %v153_v25 = vld [vmem:[#allocation0] sm:$0x1]  }
  0x22   :  { %64 = vrot.lane.b32.xlu0 %v63_v10, %s266_s16  ;;  %v159_v26 = vld [vmem:[#allocation0] sm:$0x1]  }
  0x23   :  { %70 = vrot.lane.b32.xlu1 %v69_v11, %s267_s17  ;;  %v165_v27 = vld [vmem:[#allocation0] sm:$0x1]  }
  0x24   :  { %76 = vrot.lane.b32.xlu2 %v75_v12, %s268_s18  ;;  %v171_v28 = vld [vmem:[#allocation0] sm:$0x1]  }
  0x25   :  { %v177_v29 = vld [vmem:[#allocation0] sm:$0x1]  }
  0x26   :  { %v183_v30 = vld [vmem:[#allocation0] sm:$0x1]  }
  0x27   :  { %v189_v31 = vld [vmem:[#allocation0] sm:$0x1]  }
  0x28   :  { %v6_v55 = vld [vmem:[#allocation0] sm:$0x1]  }
  0x29   :  { %8 = vst.msk [vmem:[%s430_s1] sm:$0x1] %vm7_vm0, %v6_v55  }
  0x2a   :  { %82 = vrot.lane.b32.xlu0 %v81_v13, %s269_s19 }
  0x2b   :  { %88 = vrot.lane.b32.xlu1 %v87_v14, %s270_s20 }
  0x2c   :  { %94 = vrot.lane.b32.xlu2 %v93_v15, %s271_s21 }
  0x32   :  { %100 = vrot.lane.b32.xlu0 %v99_v16, %s272_s22 }
  0x33   :  { %106 = vrot.lane.b32.xlu1 %v105_v17, %s273_s23 }
  0x34   :  { %112 = vrot.lane.b32.xlu2 %v111_v18, %s274_s24 }
  0x3a   :  { %118 = vrot.lane.b32.xlu0 %v117_v19, %s275_s25 }
  0x3b   :  { %124 = vrot.lane.b32.xlu1 %v123_v20, %s276_s26 }
  0x3c   :  { %130 = vrot.lane.b32.xlu2 %v129_v21, %s277_s27 }
  0x42   :  { %136 = vrot.lane.b32.xlu0 %v135_v22, %s278_s28 }
  0x43   :  { %142 = vrot.lane.b32.xlu1 %v141_v23, %s279_s29 }
  0x44   :  { %148 = vrot.lane.b32.xlu2 %v147_v24, %s280_s30 }
  0x4a   :  { %154 = vrot.lane.b32.xlu0 %v153_v25, %s281_s2 }
  0x4b   :  { %160 = vrot.lane.b32.xlu1 %v159_v26, %s282_s3 }
  0x4c   :  { %166 = vrot.lane.b32.xlu2 %v165_v27, %s283_s4 }
  0x52   :  { %172 = vrot.lane.b32.xlu0 %v171_v28, %s284_s5 }
  0x53   :  { %178 = vrot.lane.b32.xlu1 %v177_v29, %s285_s6 }
  0x54   :  { %184 = vrot.lane.b32.xlu2 %v183_v30, %s286_s7 }
  0x5a   :  { %190 = vrot.lane.b32.xlu0 %v189_v31, %s287_s0 }
  0x66   :  { %v35_v32 = vpop.permute.xlu2 %34  }
  0x67   :  { %199 = vst.msk [vmem:[%s430_s1 + $0x5] sm:$0x1] %vm7_vm0, %v35_v32  }
  0x6e   :  { %v41_v33 = vpop.permute.xlu2 %40  }
  0x6f   :  { %200 = vst.msk [vmem:[%s430_s1 + $0x6] sm:$0x1] %vm7_vm0, %v41_v33  }
  0x76   :  { %v59_v34 = vpop.permute.xlu2 %58  }
  0x77   :  { %203 = vst.msk [vmem:[%s430_s1 + $0x9] sm:$0x1] %vm7_vm0, %v59_v34  }
  0x7c   :  { %v11_v35 = vpop.permute.xlu0 %10  }
  0x7d   :  { %v23_v36 = vpop.permute.xlu1 %22   ;;  %195 = vst.msk [vmem:[%s430_s1 + $0x1] sm:$0x1] %vm7_vm0, %v11_v35  }
  0x7e   :  { %197 = vst.msk [vmem:[%s430_s1 + $0x3] sm:$0x1] %vm7_vm0, %v23_v36   ;;  %v77_v37 = vpop.permute.xlu2 %76  }
  0x7f   :  { %206 = vst.msk [vmem:[%s430_s1 + $0xc] sm:$0x1] %vm7_vm0, %v77_v37  }
  0x84   :  { %v17_v38 = vpop.permute.xlu0 %16  }
  0x85   :  { %v29_v39 = vpop.permute.xlu1 %28   ;;  %196 = vst.msk [vmem:[%s430_s1 + $0x2] sm:$0x1] %vm7_vm0, %v17_v38  }
  0x86   :  { %198 = vst.msk [vmem:[%s430_s1 + $0x4] sm:$0x1] %vm7_vm0, %v29_v39   ;;  %v95_v40 = vpop.permute.xlu2 %94  }
  0x87   :  { %209 = vst.msk [vmem:[%s430_s1 + $0xf] sm:$0x1] %vm7_vm0, %v95_v40  }
  0x8c   :  { %v47_v41 = vpop.permute.xlu0 %46  }
  0x8d   :  { %v53_v42 = vpop.permute.xlu1 %52   ;;  %201 = vst.msk [vmem:[%s430_s1 + $0x7] sm:$0x1] %vm7_vm0, %v47_v41  }
  0x8e   :  { %202 = vst.msk [vmem:[%s430_s1 + $0x8] sm:$0x1] %vm7_vm0, %v53_v42   ;;  %v113_v43 = vpop.permute.xlu2 %112  }
  0x8f   :  { %212 = vst.msk [vmem:[%s430_s1 + $0x12] sm:$0x1] %vm7_vm0, %v113_v43  }
  0x94   :  { %v65_v44 = vpop.permute.xlu0 %64  }
  0x95   :  { %v71_v45 = vpop.permute.xlu1 %70   ;;  %204 = vst.msk [vmem:[%s430_s1 + $0xa] sm:$0x1] %vm7_vm0, %v65_v44  }
  0x96   :  { %205 = vst.msk [vmem:[%s430_s1 + $0xb] sm:$0x1] %vm7_vm0, %v71_v45   ;;  %v131_v46 = vpop.permute.xlu2 %130  }
  0x97   :  { %215 = vst.msk [vmem:[%s430_s1 + $0x15] sm:$0x1] %vm7_vm0, %v131_v46  }
  0x9c   :  { %v83_v47 = vpop.permute.xlu0 %82  }
  0x9d   :  { %v89_v48 = vpop.permute.xlu1 %88   ;;  %207 = vst.msk [vmem:[%s430_s1 + $0xd] sm:$0x1] %vm7_vm0, %v83_v47  }
  0x9e   :  { %208 = vst.msk [vmem:[%s430_s1 + $0xe] sm:$0x1] %vm7_vm0, %v89_v48   ;;  %v149_v49 = vpop.permute.xlu2 %148  }
  0x9f   :  { %218 = vst.msk [vmem:[%s430_s1 + $0x18] sm:$0x1] %vm7_vm0, %v149_v49  }
  0xa4   :  { %v101_v50 = vpop.permute.xlu0 %100  }
  0xa5   :  { %v107_v51 = vpop.permute.xlu1 %106   ;;  %210 = vst.msk [vmem:[%s430_s1 + $0x10] sm:$0x1] %vm7_vm0, %v101_v50  }
  0xa6   :  { %211 = vst.msk [vmem:[%s430_s1 + $0x11] sm:$0x1] %vm7_vm0, %v107_v51   ;;  %v167_v52 = vpop.permute.xlu2 %166  }
  0xa7   :  { %221 = vst.msk [vmem:[%s430_s1 + $0x1b] sm:$0x1] %vm7_vm0, %v167_v52  }
  0xac   :  { %v119_v53 = vpop.permute.xlu0 %118  }
  0xad   :  { %v125_v54 = vpop.permute.xlu1 %124   ;;  %213 = vst.msk [vmem:[%s430_s1 + $0x13] sm:$0x1] %vm7_vm0, %v119_v53  }
  0xae   :  { %214 = vst.msk [vmem:[%s430_s1 + $0x14] sm:$0x1] %vm7_vm0, %v125_v54   ;;  %v185_v56 = vpop.permute.xlu2 %184  }
  0xaf   :  { %224 = vst.msk [vmem:[%s430_s1 + $0x1e] sm:$0x1] %vm7_vm0, %v185_v56  }
  0xb4   :  { %v137_v57 = vpop.permute.xlu0 %136  }
  0xb5   :  { %v143_v58 = vpop.permute.xlu1 %142   ;;  %216 = vst.msk [vmem:[%s430_s1 + $0x16] sm:$0x1] %vm7_vm0, %v137_v57  }
  0xb6   :  { %217 = vst.msk [vmem:[%s430_s1 + $0x17] sm:$0x1] %vm7_vm0, %v143_v58  }
  0xbc   :  { %v155_v59 = vpop.permute.xlu0 %154  }
  0xbd   :  { %v161_v60 = vpop.permute.xlu1 %160   ;;  %219 = vst.msk [vmem:[%s430_s1 + $0x19] sm:$0x1] %vm7_vm0, %v155_v59  }
  0xbe   :  { %220 = vst.msk [vmem:[%s430_s1 + $0x1a] sm:$0x1] %vm7_vm0, %v161_v60  }
  0xc4   :  { %v173_v61 = vpop.permute.xlu0 %172  }
  0xc5   :  { %v179_v62 = vpop.permute.xlu1 %178   ;;  %222 = vst.msk [vmem:[%s430_s1 + $0x1c] sm:$0x1] %vm7_vm0, %v173_v61  }
  0xc6   :  { %223 = vst.msk [vmem:[%s430_s1 + $0x1d] sm:$0x1] %vm7_vm0, %v179_v62  }
  0xcc   :  { %v191_v63 = vpop.permute.xlu0 %190  }
  0xcd   :  { %225 = vst.msk [vmem:[%s430_s1 + $0x1f] sm:$0x1] %vm7_vm0, %v191_v63  }

// kernel: tile.37
= control target key start
LH: loop header
LB: loop body
LE: loop exit
PB: predicated region body
PF: predicated region fallthrough
CT: control target
= control target key end

     0   :  { %s40_s0 = inlined_call_operand.vmem [shape: f32[4], index: 0, kind: input, shape index: {}]   ;;  %s41_s1 = inlined_call_operand.vmem [shape: f32[32,4], index: 1, kind: output, shape index: {}]  }
   0x1   :  { %v4_v0 = vld [vmem:[%s40_s0] ss:$0 sm:$0xff] }
   0x2   :  { %5 = vst [vmem:[%s41_s1] sm:$0xff] %v4_v0 }
   0x3   :  { %12 = vst [vmem:[%s41_s1 + $0x8] sm:$0xff] %v4_v0 }
   0x4   :  { %13 = vst [vmem:[%s41_s1 + $0x10] sm:$0xff] %v4_v0 }
   0x5   :  { %14 = vst [vmem:[%s41_s1 + $0x18] sm:$0xff] %v4_v0 }

// kernel: tile.39
= control target key start
LH: loop header
LB: loop body
LE: loop exit
PB: predicated region body
PF: predicated region fallthrough
CT: control target
= control target key end

     0   :  { %s259_s10 = smov 124   ;;  %s260_s11 = smov 116   ;;  %vm3_vm0 = vcmask 31744   ;;  %vm9_vm1 = vcmask 1048544   ;;  %vm15_vm2 = vcmask 1015744   ;;  %vm21_vm3 = vcmask 982944   ;;  %s399_s0 = inlined_call_operand.vmem [shape: f32[32,4], index: 0, kind: input, shape index: {}]   ;;  %s400_s1 = inlined_call_operand.vmem [shape: f32[1,128], index: 1, kind: output, shape index: {}]  }
   0x1   :  { %v197_v0 = vld [vmem:[%s399_s0 + $0x1f] sm:$0x1]   ;;  %v199_v1 = vld [vmem:[%s399_s0 + $0x1d] sm:$0x1]   ;;  %v201_v2 = vld [vmem:[%s399_s0 + $0x1b] sm:$0x1]  }
   0x2   :  { %7 = vrot.lane.b32.xlu0 %v197_v0, %s259_s10  ;;  %19 = vrot.lane.b32.xlu1 %v199_v1, %s260_s11  ;;  %s261_s14 = smov 108   ;;  %v198_v3 = vld [vmem:[%s399_s0 + $0x1e] sm:$0x1]   ;;  %v200_v4 = vld [vmem:[%s399_s0 + $0x1c] sm:$0x1]   ;;  %s262_s19 = smov 120  }
   0x3   :  { %31 = vrot.lane.b32.xlu2 %v201_v2, %s261_s14  ;;  %s263_s20 = smov 112   ;;  %v202_v5 = vld [vmem:[%s399_s0 + $0x1a] sm:$0x1]   ;;  %s264_s23 = smov 104   ;;  %v203_v6 = vld [vmem:[%s399_s0 + $0x19] sm:$0x1]  }
   0x4   :  { %v204_v7 = vld [vmem:[%s399_s0 + $0x18] sm:$0x1]   ;;  %s265_s28 = smov 100   ;;  %s266_s29 = smov 96   ;;  %v205_v8 = vld [vmem:[%s399_s0 + $0x17] sm:$0x1]  }
   0x5   :  { %s267_s3 = smov 92   ;;  %v206_v9 = vld [vmem:[%s399_s0 + $0x16] sm:$0x1]   ;;  %v207_v10 = vld [vmem:[%s399_s0 + $0x15] sm:$0x1]   ;;  %s268_s8 = smov 88  }
   0x6   :  { %s269_s9 = smov 84   ;;  %v208_v11 = vld [vmem:[%s399_s0 + $0x14] sm:$0x1]   ;;  %s270_s12 = smov 80   ;;  %v209_v12 = vld [vmem:[%s399_s0 + $0x13] sm:$0x1]  }
   0x7   :  { %v210_v13 = vld [vmem:[%s399_s0 + $0x12] sm:$0x1]   ;;  %s271_s17 = smov 76   ;;  %s272_s18 = smov 72   ;;  %v211_v14 = vld [vmem:[%s399_s0 + $0x11] sm:$0x1]  }
   0x8   :  { %s273_s21 = smov 68   ;;  %v212_v15 = vld [vmem:[%s399_s0 + $0x10] sm:$0x1]   ;;  %v213_v16 = vld [vmem:[%s399_s0 + $0xf] sm:$0x1]   ;;  %s274_s26 = smov 64  }
   0x9   :  { %s275_s27 = smov 60   ;;  %v214_v17 = vld [vmem:[%s399_s0 + $0xe] sm:$0x1]   ;;  %s276_s30 = smov 56   ;;  %v215_v18 = vld [vmem:[%s399_s0 + $0xd] sm:$0x1]  }
   0xa   :  { %13 = vrot.lane.b32.xlu0 %v198_v3, %s262_s19  ;;  %25 = vrot.lane.b32.xlu1 %v200_v4, %s263_s20  ;;  %v216_v19 = vld [vmem:[%s399_s0 + $0xc] sm:$0x1]   ;;  %s277_s6 = smov 52   ;;  %s278_s7 = smov 48   ;;  %v217_v20 = vld [vmem:[%s399_s0 + $0xb] sm:$0x1]  }
   0xb   :  { %37 = vrot.lane.b32.xlu2 %v202_v5, %s264_s23  ;;  %s279_s10 = smov 44   ;;  %v218_v21 = vld [vmem:[%s399_s0 + $0xa] sm:$0x1]   ;;  %v219_v22 = vld [vmem:[%s399_s0 + $0x9] sm:$0x1]   ;;  %s280_s15 = smov 40  }
   0xc   :  { %s281_s16 = smov 36   ;;  %v220_v23 = vld [vmem:[%s399_s0 + $0x8] sm:$0x1]   ;;  %s282_s19 = smov 32   ;;  %v221_v24 = vld [vmem:[%s399_s0 + $0x7] sm:$0x1]  }
   0xd   :  { %v222_v25 = vld [vmem:[%s399_s0 + $0x6] sm:$0x1]   ;;  %s283_s24 = smov 28   ;;  %s284_s25 = smov 24   ;;  %v223_v26 = vld [vmem:[%s399_s0 + $0x5] sm:$0x1]  }
   0xe   :  { %v224_v27 = vld [vmem:[%s399_s0 + $0x4] sm:$0x1]   ;;  %v225_v28 = vld [vmem:[%s399_s0 + $0x3] sm:$0x1]   ;;  %s286_s4 = smov 16   ;;  %s287_s5 = smov 12  }
   0xf   :  { %v226_v29 = vld [vmem:[%s399_s0 + $0x2] sm:$0x1]   ;;  %v227_v30 = vld [vmem:[%s399_s0 + $0x1] sm:$0x1]   ;;  %s289_s11 = smov 4   ;;  %vm27_vm4 = vcmask 950144  }
  0x10   :  { %v2_v31 = vld [vmem:[%s399_s0] sm:$0x1]   ;;  %vm33_vm5 = vcmask 917344   ;;  %vm39_vm6 = vcmask 884544   ;;  %vm45_vm7 = vcmask 851744   ;;  %vm51_vm8 = vcmask 818944  }
  0x11   :  { %4 = vst.msk [vmem:[#allocation0] sm:$0x1] %vm3_vm0, %v2_v31   ;;  %vm57_vm9 = vcmask 786144   ;;  %vm63_vm10 = vcmask 753344   ;;  %vm69_vm11 = vcmask 720544   ;;  %vm75_vm12 = vcmask 687744  }
  0x12   :  { %43 = vrot.lane.b32.xlu0 %v203_v6, %s265_s28  ;;  %49 = vrot.lane.b32.xlu1 %v204_v7, %s266_s29  ;;  %s285_s28 = smov 20   ;;  %vm81_vm13 = vcmask 654944   ;;  %vm87_vm14 = vcmask 622144   ;;  %vm93_vm15 = vcmask 589344   ;;  %vm99_vm0 = vcmask 556544  }
  0x13   :  { %55 = vrot.lane.b32.xlu2 %v205_v8, %s267_s3 }
  0x1a   :  { %61 = vrot.lane.b32.xlu0 %v206_v9, %s268_s8  ;;  %67 = vrot.lane.b32.xlu1 %v207_v10, %s269_s9  ;;  %s288_s8 = smov 8  }
  0x1b   :  { %73 = vrot.lane.b32.xlu2 %v208_v11, %s270_s12 }
  0x22   :  { %79 = vrot.lane.b32.xlu0 %v209_v12, %s271_s17  ;;  %85 = vrot.lane.b32.xlu1 %v210_v13, %s272_s18 }
  0x23   :  { %91 = vrot.lane.b32.xlu2 %v211_v14, %s273_s21 }
  0x2a   :  { %97 = vrot.lane.b32.xlu0 %v212_v15, %s274_s26  ;;  %103 = vrot.lane.b32.xlu1 %v213_v16, %s275_s27 }
  0x2b   :  { %109 = vrot.lane.b32.xlu2 %v214_v17, %s276_s30 }
  0x32   :  { %115 = vrot.lane.b32.xlu0 %v215_v18, %s277_s6  ;;  %121 = vrot.lane.b32.xlu1 %v216_v19, %s278_s7 }
  0x33   :  { %127 = vrot.lane.b32.xlu2 %v217_v20, %s279_s10 }
  0x3a   :  { %133 = vrot.lane.b32.xlu0 %v218_v21, %s280_s15  ;;  %139 = vrot.lane.b32.xlu1 %v219_v22, %s281_s16 }
  0x3b   :  { %145 = vrot.lane.b32.xlu2 %v220_v23, %s282_s19 }
  0x42   :  { %151 = vrot.lane.b32.xlu0 %v221_v24, %s283_s24  ;;  %157 = vrot.lane.b32.xlu1 %v222_v25, %s284_s25 }
  0x43   :  { %163 = vrot.lane.b32.xlu2 %v223_v26, %s285_s28 }
  0x4a   :  { %169 = vrot.lane.b32.xlu0 %v224_v27, %s286_s4  ;;  %175 = vrot.lane.b32.xlu1 %v225_v28, %s287_s5 }
  0x4b   :  { %181 = vrot.lane.b32.xlu2 %v226_v29, %s288_s8 }
  0x52   :  { %187 = vrot.lane.b32.xlu0 %v227_v30, %s289_s11 }
  0x5d   :  { %v32_v32 = vpop.permute.xlu2 %31  }
  0x65   :  { %v38_v33 = vpop.permute.xlu2 %37  }
  0x6d   :  { %v56_v34 = vpop.permute.xlu2 %55  }
  0x74   :  { %v8_v35 = vpop.permute.xlu0 %7   ;;  %v20_v36 = vpop.permute.xlu1 %19  }
  0x75   :  { %10 = vst.msk [vmem:[#allocation0] sm:$0x1] %vm9_vm1, %v8_v35   ;;  %v74_v37 = vpop.permute.xlu2 %73   ;;  %vm105_vm1 = vcmask 523744  }
  0x7c   :  { %v14_v38 = vpop.permute.xlu0 %13   ;;  %v26_v39 = vpop.permute.xlu1 %25  }
  0x7d   :  { %16 = vst.msk [vmem:[#allocation0] sm:$0x1] %vm15_vm2, %v14_v38   ;;  %v92_v40 = vpop.permute.xlu2 %91   ;;  %vm111_vm2 = vcmask 490944  }
  0x7e   :  { %22 = vst.msk [vmem:[#allocation0] sm:$0x1] %vm21_vm3, %v20_v36   ;;  %vm117_vm3 = vcmask 458144  }
  0x7f   :  { %28 = vst.msk [vmem:[#allocation0] sm:$0x1] %vm27_vm4, %v26_v39   ;;  %vm123_vm4 = vcmask 425344  }
  0x80   :  { %34 = vst.msk [vmem:[#allocation0] sm:$0x1] %vm33_vm5, %v32_v32   ;;  %vm129_vm5 = vcmask 392544  }
  0x81   :  { %40 = vst.msk [vmem:[#allocation0] sm:$0x1] %vm39_vm6, %v38_v33   ;;  %vm135_vm6 = vcmask 359744  }
  0x84   :  { %v44_v41 = vpop.permute.xlu0 %43   ;;  %v50_v42 = vpop.permute.xlu1 %49  }
  0x85   :  { %46 = vst.msk [vmem:[#allocation0] sm:$0x1] %vm45_vm7, %v44_v41   ;;  %v110_v43 = vpop.permute.xlu2 %109   ;;  %vm141_vm7 = vcmask 326944  }
  0x86   :  { %52 = vst.msk [vmem:[#allocation0] sm:$0x1] %vm51_vm8, %v50_v42   ;;  %vm147_vm8 = vcmask 294144  }
  0x87   :  { %58 = vst.msk [vmem:[#allocation0] sm:$0x1] %vm57_vm9, %v56_v34   ;;  %vm153_vm9 = vcmask 261344  }
  0x8c   :  { %v62_v44 = vpop.permute.xlu0 %61   ;;  %v68_v45 = vpop.permute.xlu1 %67  }
  0x8d   :  { %64 = vst.msk [vmem:[#allocation0] sm:$0x1] %vm63_vm10, %v62_v44   ;;  %v128_v46 = vpop.permute.xlu2 %127   ;;  %vm159_vm10 = vcmask 228544  }
  0x8e   :  { %70 = vst.msk [vmem:[#allocation0] sm:$0x1] %vm69_vm11, %v68_v45   ;;  %vm165_vm11 = vcmask 195744  }
  0x8f   :  { %76 = vst.msk [vmem:[#allocation0] sm:$0x1] %vm75_vm12, %v74_v37   ;;  %vm171_vm12 = vcmask 162944  }
  0x94   :  { %v80_v47 = vpop.permute.xlu0 %79   ;;  %v86_v48 = vpop.permute.xlu1 %85  }
  0x95   :  { %82 = vst.msk [vmem:[#allocation0] sm:$0x1] %vm81_vm13, %v80_v47   ;;  %v146_v49 = vpop.permute.xlu2 %145   ;;  %vm177_vm13 = vcmask 130144  }
  0x96   :  { %88 = vst.msk [vmem:[#allocation0] sm:$0x1] %vm87_vm14, %v86_v48   ;;  %vm183_vm14 = vcmask 97344  }
  0x97   :  { %94 = vst.msk [vmem:[#allocation0] sm:$0x1] %vm93_vm15, %v92_v40   ;;  %vm189_vm15 = vcmask 64544  }
  0x9c   :  { %v98_v50 = vpop.permute.xlu0 %97   ;;  %v104_v51 = vpop.permute.xlu1 %103  }
  0x9d   :  { %100 = vst.msk [vmem:[#allocation0] sm:$0x1] %vm99_vm0, %v98_v50   ;;  %v164_v52 = vpop.permute.xlu2 %163  }
  0x9e   :  { %106 = vst.msk [vmem:[#allocation0] sm:$0x1] %vm105_vm1, %v104_v51  }
  0x9f   :  { %112 = vst.msk [vmem:[#allocation0] sm:$0x1] %vm111_vm2, %v110_v43  }
  0xa4   :  { %v116_v53 = vpop.permute.xlu0 %115   ;;  %v122_v54 = vpop.permute.xlu1 %121  }
  0xa5   :  { %118 = vst.msk [vmem:[#allocation0] sm:$0x1] %vm117_vm3, %v116_v53   ;;  %v182_v55 = vpop.permute.xlu2 %181  }
  0xa6   :  { %124 = vst.msk [vmem:[#allocation0] sm:$0x1] %vm123_vm4, %v122_v54  }
  0xa7   :  { %130 = vst.msk [vmem:[#allocation0] sm:$0x1] %vm129_vm5, %v128_v46  }
  0xac   :  { %v134_v56 = vpop.permute.xlu0 %133   ;;  %v140_v57 = vpop.permute.xlu1 %139  }
  0xad   :  { %136 = vst.msk [vmem:[#allocation0] sm:$0x1] %vm135_vm6, %v134_v56  }
  0xae   :  { %142 = vst.msk [vmem:[#allocation0] sm:$0x1] %vm141_vm7, %v140_v57  }
  0xaf   :  { %148 = vst.msk [vmem:[#allocation0] sm:$0x1] %vm147_vm8, %v146_v49  }
  0xb4   :  { %v152_v58 = vpop.permute.xlu0 %151   ;;  %v158_v59 = vpop.permute.xlu1 %157  }
  0xb5   :  { %154 = vst.msk [vmem:[#allocation0] sm:$0x1] %vm153_vm9, %v152_v58  }
  0xb6   :  { %160 = vst.msk [vmem:[#allocation0] sm:$0x1] %vm159_vm10, %v158_v59  }
  0xb7   :  { %166 = vst.msk [vmem:[#allocation0] sm:$0x1] %vm165_vm11, %v164_v52  }
  0xbc   :  { %v170_v60 = vpop.permute.xlu0 %169   ;;  %v176_v61 = vpop.permute.xlu1 %175  }
  0xbd   :  { %172 = vst.msk [vmem:[#allocation0] sm:$0x1] %vm171_vm12, %v170_v60  }
  0xbe   :  { %178 = vst.msk [vmem:[#allocation0] sm:$0x1] %vm177_vm13, %v176_v61  }
  0xbf   :  { %184 = vst.msk [vmem:[#allocation0] sm:$0x1] %vm183_vm14, %v182_v55  }
  0xc4   :  { %v188_v62 = vpop.permute.xlu0 %187  }
  0xc5   :  { %190 = vst.msk [vmem:[#allocation0] sm:$0x1] %vm189_vm15, %v188_v62  }
  0xcc   :  { %v193_v63 = vld [vmem:[#allocation0] sm:$0x1] }
  0xcd   :  { %196 = vst [vmem:[%s400_s1] sm:$0x1] %v193_v63 }

// kernel: two_conv_block.4
= control target key start
LH: loop header
LB: loop body
LE: loop exit
PB: predicated region body
PF: predicated region fallthrough
CT: control target
= control target key end

     0   :  { %vm50_vm0 = vcmask 1040384   ;;  %vm136_vm1 = vcmask 1046528   ;;  %vm276_vm3 = vcmask 1045504   ;;  %s854_s2 = inlined_call_operand.vmem [shape: f32[3,256,128], index: 2, kind: input, shape index: {}]   ;;  %s855_s1 = inlined_call_operand.vmem [shape: f32[2,256], index: 1, kind: input, shape index: {}]   ;;  %s856_s0 = inlined_call_operand.vmem [shape: f32[1,16,256], index: 0, kind: input, shape index: {}]   ;;  %s857_s3 = inlined_call_operand.vmem [shape: f32[1,16,128], index: 3, kind: output, shape index: {0}]   ;;  %s858_s4 = inlined_call_operand.vmem [shape: f32[1,2,128], index: 4, kind: output, shape index: {1}]  }
   0x1   :  { %v382_v0 = vld [vmem:[%s854_s2 + $0x178] sm:$0xff]  ;;  %v381_v4 = vld [vmem:[%s854_s2 + $0x170] sm:$0xff]  ;;  %v380_v8 = vld [vmem:[%s854_s2 + $0x168] sm:$0xff] }
   0x2   :  { %v398_v1 = vld [vmem:[%s854_s2 + $0x1f8] sm:$0xff]  ;;  %151 = vmatpush.msra.mxu0 %v382_v0  ;;  %v397_v5 = vld [vmem:[%s854_s2 + $0x1f0] sm:$0xff]  ;;  %v396_v9 = vld [vmem:[%s854_s2 + $0x1e8] sm:$0xff] }
   0x3   :  { %v82_v2 = vld [vmem:[%s854_s2 + $0x78] sm:$0xff]  ;;  %174 = vmatpush.msra.mxu1 %v398_v1  ;;  %v81_v6 = vld [vmem:[%s854_s2 + $0x70] sm:$0xff]  ;;  %v80_v10 = vld [vmem:[%s854_s2 + $0x68] sm:$0xff] }
   0x4   :  { %v98_v3 = vld [vmem:[%s854_s2 + $0xf8] sm:$0xff]  ;;  %197 = vmatpush.msra.mxu2 %v82_v2  ;;  %v97_v7 = vld [vmem:[%s854_s2 + $0xf0] sm:$0xff]  ;;  %152 = vmatpush.msra.mxu0 %v381_v4  ;;  %v96_v11 = vld [vmem:[%s854_s2 + $0xe8] sm:$0xff] }
   0x5   :  { %220 = vmatpush.msra.mxu3 %v98_v3  ;;  %175 = vmatpush.msra.mxu1 %v397_v5  ;;  %v379_v12 = vld [vmem:[%s854_s2 + $0x160] sm:$0xff]  ;;  %v378_v16 = vld [vmem:[%s854_s2 + $0x158] sm:$0xff]  ;;  %v377_v20 = vld [vmem:[%s854_s2 + $0x150] sm:$0xff] }
   0x6   :  { %198 = vmatpush.msra.mxu2 %v81_v6  ;;  %v395_v13 = vld [vmem:[%s854_s2 + $0x1e0] sm:$0xff]  ;;  %153 = vmatpush.msra.mxu0 %v380_v8  ;;  %v394_v17 = vld [vmem:[%s854_s2 + $0x1d8] sm:$0xff]  ;;  %v393_v21 = vld [vmem:[%s854_s2 + $0x1d0] sm:$0xff] }
   0x7   :  { %221 = vmatpush.msra.mxu3 %v97_v7  ;;  %176 = vmatpush.msra.mxu1 %v396_v9  ;;  %v79_v14 = vld [vmem:[%s854_s2 + $0x60] sm:$0xff]  ;;  %v78_v18 = vld [vmem:[%s854_s2 + $0x58] sm:$0xff]  ;;  %v77_v22 = vld [vmem:[%s854_s2 + $0x50] sm:$0xff] }
   0x8   :  { %v95_v15 = vld [vmem:[%s854_s2 + $0xe0] sm:$0xff]  ;;  %199 = vmatpush.msra.mxu2 %v80_v10  ;;  %154 = vmatpush.msra.mxu0 %v379_v12  ;;  %v94_v19 = vld [vmem:[%s854_s2 + $0xd8] sm:$0xff]  ;;  %v93_v23 = vld [vmem:[%s854_s2 + $0xd0] sm:$0xff] }
   0x9   :  { %222 = vmatpush.msra.mxu3 %v96_v11  ;;  %177 = vmatpush.msra.mxu1 %v395_v13  ;;  %v376_v24 = vld [vmem:[%s854_s2 + $0x148] sm:$0xff]  ;;  %v375_v28 = vld [vmem:[%s854_s2 + $0x140] sm:$0xff]  ;;  %v374_v32 = vld [vmem:[%s854_s2 + $0x138] sm:$0xff] }
   0xa   :  { %200 = vmatpush.msra.mxu2 %v79_v14  ;;  %155 = vmatpush.msra.mxu0 %v378_v16  ;;  %v392_v25 = vld [vmem:[%s854_s2 + $0x1c8] sm:$0xff]  ;;  %v391_v29 = vld [vmem:[%s854_s2 + $0x1c0] sm:$0xff]  ;;  %v390_v33 = vld [vmem:[%s854_s2 + $0x1b8] sm:$0xff] }
   0xb   :  { %223 = vmatpush.msra.mxu3 %v95_v15  ;;  %178 = vmatpush.msra.mxu1 %v394_v17  ;;  %v76_v26 = vld [vmem:[%s854_s2 + $0x48] sm:$0xff]  ;;  %v75_v30 = vld [vmem:[%s854_s2 + $0x40] sm:$0xff]  ;;  %v74_v34 = vld [vmem:[%s854_s2 + $0x38] sm:$0xff] }
   0xc   :  { %201 = vmatpush.msra.mxu2 %v78_v18  ;;  %156 = vmatpush.msra.mxu0 %v377_v20  ;;  %v92_v27 = vld [vmem:[%s854_s2 + $0xc8] sm:$0xff]  ;;  %v91_v31 = vld [vmem:[%s854_s2 + $0xc0] sm:$0xff]  ;;  %v90_v35 = vld [vmem:[%s854_s2 + $0xb8] sm:$0xff] }
   0xd   :  { %224 = vmatpush.msra.mxu3 %v94_v19  ;;  %179 = vmatpush.msra.mxu1 %v393_v21  ;;  %v373_v36 = vld [vmem:[%s854_s2 + $0x130] sm:$0xff]  ;;  %v372_v40 = vld [vmem:[%s854_s2 + $0x128] sm:$0xff]  ;;  %v371_v44 = vld [vmem:[%s854_s2 + $0x120] sm:$0xff] }
   0xe   :  { %202 = vmatpush.msra.mxu2 %v77_v22  ;;  %157 = vmatpush.msra.mxu0 %v376_v24  ;;  %v389_v37 = vld [vmem:[%s854_s2 + $0x1b0] sm:$0xff]  ;;  %v388_v41 = vld [vmem:[%s854_s2 + $0x1a8] sm:$0xff]  ;;  %v387_v45 = vld [vmem:[%s854_s2 + $0x1a0] sm:$0xff] }
   0xf   :  { %225 = vmatpush.msra.mxu3 %v93_v23  ;;  %180 = vmatpush.msra.mxu1 %v392_v25  ;;  %v73_v38 = vld [vmem:[%s854_s2 + $0x30] sm:$0xff]  ;;  %v72_v42 = vld [vmem:[%s854_s2 + $0x28] sm:$0xff]  ;;  %v71_v46 = vld [vmem:[%s854_s2 + $0x20] sm:$0xff] }
  0x10   :  { %203 = vmatpush.msra.mxu2 %v76_v26  ;;  %158 = vmatpush.msra.mxu0 %v375_v28  ;;  %v89_v39 = vld [vmem:[%s854_s2 + $0xb0] sm:$0xff]  ;;  %v88_v43 = vld [vmem:[%s854_s2 + $0xa8] sm:$0xff]  ;;  %v87_v47 = vld [vmem:[%s854_s2 + $0xa0] sm:$0xff] }
  0x11   :  { %226 = vmatpush.msra.mxu3 %v92_v27  ;;  %181 = vmatpush.msra.mxu1 %v391_v29  ;;  %v370_v48 = vld [vmem:[%s854_s2 + $0x118] sm:$0xff]  ;;  %v369_v52 = vld [vmem:[%s854_s2 + $0x110] sm:$0xff]  ;;  %v368_v56 = vld [vmem:[%s854_s2 + $0x108] sm:$0xff] }
  0x12   :  { %204 = vmatpush.msra.mxu2 %v75_v30  ;;  %159 = vmatpush.msra.mxu0 %v374_v32  ;;  %v386_v49 = vld [vmem:[%s854_s2 + $0x198] sm:$0xff]  ;;  %v385_v53 = vld [vmem:[%s854_s2 + $0x190] sm:$0xff]  ;;  %v384_v57 = vld [vmem:[%s854_s2 + $0x188] sm:$0xff] }
  0x13   :  { %227 = vmatpush.msra.mxu3 %v91_v31  ;;  %182 = vmatpush.msra.mxu1 %v390_v33  ;;  %v70_v50 = vld [vmem:[%s854_s2 + $0x18] sm:$0xff]  ;;  %v69_v54 = vld [vmem:[%s854_s2 + $0x10] sm:$0xff]  ;;  %v68_v58 = vld [vmem:[%s854_s2 + $0x8] sm:$0xff] }
  0x14   :  { %205 = vmatpush.msra.mxu2 %v74_v34  ;;  %160 = vmatpush.msra.mxu0 %v373_v36  ;;  %v86_v51 = vld [vmem:[%s854_s2 + $0x98] sm:$0xff]  ;;  %v85_v55 = vld [vmem:[%s854_s2 + $0x90] sm:$0xff]  ;;  %v84_v59 = vld [vmem:[%s854_s2 + $0x88] sm:$0xff] }
  0x15   :  { %228 = vmatpush.msra.mxu3 %v90_v35  ;;  %183 = vmatpush.msra.mxu1 %v389_v37  ;;  %v367_v60 = vld [vmem:[%s854_s2 + $0x100] sm:$0xff]  ;;  %v19_v5 = vld [vmem:[%s856_s0 + $0x10] sm:$0xff]  ;;  %v18_v6 = vld [vmem:[%s856_s0 + $0x8] sm:$0xff] }
  0x16   :  { %206 = vmatpush.msra.mxu2 %v73_v38  ;;  %161 = vmatpush.msra.mxu0 %v372_v40  ;;  %v16_v61 = vld [vmem:[%s855_s1] sm:$0xf]  ;;  %v20_v10 = vld [vmem:[%s856_s0 + $0x18] sm:$0xff]  ;;  %v417_v18 = vld [vmem:[%s854_s2 + $0x270] sm:$0xff] }
  0x17   :  { %229 = vmatpush.msra.mxu3 %v89_v39  ;;  %184 = vmatpush.msra.mxu1 %v388_v41  ;;  %v383_v62 = vld [vmem:[%s854_s2 + $0x180] sm:$0xff]  ;;  %v22_v0 = vperm.slane %v16_v61, 0  ;;  %v23_v1 = vperm.slane %v16_v61, 2  ;;  %v32_v2 = vperm.slane %v16_v61, 1  ;;  %v33_v3 = vperm.slane %v16_v61, 3  ;;  %v418_v13 = vld [vmem:[%s854_s2 + $0x278] sm:$0xff]  ;;  %vm758_vm2 = vmneg %vm50_vm0 }
  0x18   :  { %207 = vmatpush.msra.mxu2 %v72_v42  ;;  %162 = vmatpush.msra.mxu0 %v371_v44  ;;  %v67_v63 = vld [vmem:[%s854_s2] sm:$0xff]  ;;  %v434_v14 = vld [vmem:[%s854_s2 + $0x2f8] sm:$0xff]  ;;  %v433_v20 = vld [vmem:[%s854_s2 + $0x2f0] sm:$0xff] }
  0x19   :  { %230 = vmatpush.msra.mxu3 %v88_v43  ;;  %185 = vmatpush.msra.mxu1 %v387_v45  ;;  %v17_v4 = vld [vmem:[%s856_s0] sm:$0xff]  ;;  %v26_v8 = vperm.slane %v22_v0, 0  ;;  %v36_v9 = vperm.slane %v32_v2, 1  ;;  %v27_v11 = vperm.slane %v23_v1, 0  ;;  %v37_v12 = vperm.slane %v33_v3, 1  ;;  %v416_v24 = vld [vmem:[%s854_s2 + $0x268] sm:$0xff] }
  0x1a   :  { %208 = vmatpush.msra.mxu2 %v71_v46  ;;  %163 = vmatpush.msra.mxu0 %v370_v48  ;;  %v83_v7 = vld [vmem:[%s854_s2 + $0x80] sm:$0xff]  ;;  %v432_v26 = vld [vmem:[%s854_s2 + $0x2e8] sm:$0xff]  ;;  %v414_v36 = vld [vmem:[%s854_s2 + $0x258] sm:$0xff] }
  0x1b   :  { %231 = vmatpush.msra.mxu3 %v87_v47  ;;  %186 = vmatpush.msra.mxu1 %v386_v49  ;;  %v28_v15 = vmul.f32 %v26_v8, %v17_v4  ;;  %v30_v16 = vmul.f32 %v26_v8, %v19_v5  ;;  %v29_v17 = vmul.f32 %v27_v11, %v18_v6  ;;  %v415_v30 = vld [vmem:[%s854_s2 + $0x260] sm:$0xff]  ;;  %v430_v38 = vld [vmem:[%s854_s2 + $0x2d8] sm:$0xff]  ;;  %v413_v41 = vld [vmem:[%s854_s2 + $0x250] sm:$0xff] }
  0x1c   :  { %209 = vmatpush.msra.mxu2 %v70_v50  ;;  %164 = vmatpush.msra.mxu0 %v369_v52  ;;  %v31_v19 = vmul.f32 %v27_v11, %v20_v10  ;;  %v431_v32 = vld [vmem:[%s854_s2 + $0x2e0] sm:$0xff]  ;;  %v429_v44 = vld [vmem:[%s854_s2 + $0x2d0] sm:$0xff]  ;;  %v412_v45 = vld [vmem:[%s854_s2 + $0x248] sm:$0xff] }
  0x1d   :  { %232 = vmatpush.msra.mxu3 %v86_v51  ;;  %187 = vmatpush.msra.mxu1 %v385_v53  ;;  %v38_v21 = vadd.f32 %v36_v9, %v28_v15  ;;  %v40_v22 = vadd.f32 %v36_v9, %v30_v16  ;;  %v39_v23 = vadd.f32 %v37_v12, %v29_v17  ;;  %v428_v48 = vld [vmem:[%s854_s2 + $0x2c8] sm:$0xff]  ;;  %v411_v52 = vld [vmem:[%s854_s2 + $0x240] sm:$0xff]  ;;  %v425_v61 = vld [vmem:[%s854_s2 + $0x2b0] sm:$0xff] }
  0x1e   :  { %210 = vmatpush.msra.mxu2 %v69_v54  ;;  %165 = vmatpush.msra.mxu0 %v368_v56  ;;  %v41_v25 = vadd.f32 %v37_v12, %v31_v19  ;;  %v427_v53 = vld [vmem:[%s854_s2 + $0x2c0] sm:$0xff]  ;;  %v410_v56 = vld [vmem:[%s854_s2 + $0x238] sm:$0xff]  ;;  %v424_v0 = vld [vmem:[%s854_s2 + $0x2a8] sm:$0xff] }
  0x1f   :  { %233 = vmatpush.msra.mxu3 %v85_v55  ;;  %188 = vmatpush.msra.mxu1 %v384_v57  ;;  %v42_v27 = vmax.f32 %v38_v21, 0.0  ;;  %v44_v28 = vmax.f32 %v40_v22, 0.0  ;;  %v43_v29 = vmax.f32 %v39_v23, 0.0  ;;  %v426_v57 = vld [vmem:[%s854_s2 + $0x2b8] sm:$0xff]  ;;  %v407_v2 = vld [vmem:[%s854_s2 + $0x220] sm:$0xff]  ;;  %v405_v8 = vld [vmem:[%s854_s2 + $0x210] sm:$0xff] }
  0x20   :  { %211 = vmatpush.msra.mxu2 %v68_v58  ;;  %166 = vmatpush.msra.mxu0 %v367_v60  ;;  %v45_v31 = vmax.f32 %v41_v25, 0.0  ;;  %v423_v3 = vld [vmem:[%s854_s2 + $0x2a0] sm:$0xff]  ;;  %v406_v6 = vld [vmem:[%s854_s2 + $0x218] sm:$0xff]  ;;  %v421_v9 = vld [vmem:[%s854_s2 + $0x290] sm:$0xff] }
  0x21   :  { %234 = vmatpush.msra.mxu3 %v84_v59  ;;  %189 = vmatpush.msra.mxu1 %v383_v62  ;;  %v51_v33 = vrot.slane %v42_v27, 7  ;;  %v53_v34 = vrot.slane %v44_v28, 7  ;;  %v52_v35 = vrot.slane %v43_v29, 7  ;;  %v409_v59 = vld [vmem:[%s854_s2 + $0x230] sm:$0xff]  ;;  %v408_v62 = vld [vmem:[%s854_s2 + $0x228] sm:$0xff]  ;;  %v419_v19 = vld [vmem:[%s854_s2 + $0x280] sm:$0xff] }
  0x22   :  { %212 = vmatpush.msra.mxu2 %v67_v63  ;;  %291 = vmatpush.msrb.mxu0 %v418_v13  ;;  %v55_v37 = vrot.slane %v45_v31, 7  ;;  %v404_v10 = vld [vmem:[%s854_s2 + $0x208] sm:$0xff] }
  0x23   :  { %235 = vmatpush.msra.mxu3 %v83_v7  ;;  %314 = vmatpush.msrb.mxu1 %v434_v14  ;;  %v730_v39 = vsel %vm50_vm0, %v51_v33, %v53_v34  ;;  %v733_v40 = vsel %vm50_vm0, 0.0, %v51_v33  ;;  %v742_v43 = vsel %vm50_vm0, 0.0, %v52_v35  ;;  %v779_v58 = vsel %vm50_vm0, %v53_v34, 0.0  ;;  %v422_v7 = vld [vmem:[%s854_s2 + $0x298] sm:$0xff] }
  0x24   :  { %435 = vmatpush.msrb.mxu2 %v418_v13  ;;  %292 = vmatpush.msrb.mxu0 %v417_v18  ;;  %v739_v42 = vsel %vm50_vm0, %v52_v35, %v55_v37  ;;  %v137_v46 = vrot.slane %v733_v40, 1  ;;  %v138_v47 = vrot.slane %v730_v39, 1  ;;  %v140_v49 = vrot.slane %v742_v43, 1 }
  0x25   :  { %451 = vmatpush.msrb.mxu3 %v434_v14  ;;  %315 = vmatpush.msrb.mxu1 %v433_v20  ;;  %v141_v50 = vrot.slane %v739_v42, 1  ;;  %v787_v60 = vsel %vm50_vm0, %v55_v37, 0.0  ;;  %v143_v63 = vrot.slane %v779_v58, 1  ;;  %v277_v11 = vrot.slane %v733_v40, 2  ;;  %v420_v14 = vld [vmem:[%s854_s2 + $0x288] sm:$0xff] }
  0x26   :  { %436 = vmatpush.msrb.mxu2 %v417_v18  ;;  %293 = vmatpush.msrb.mxu0 %v416_v24  ;;  %v139_v54 = vsel %vm136_vm1, %v137_v46, %v138_v47  ;;  %v145_v1 = vrot.slane %v787_v60, 1  ;;  %v278_v12 = vrot.slane %v730_v39, 2  ;;  %v283_v13 = vrot.slane %v779_v58, 2  ;;  %v403_v18 = vld [vmem:[%s854_s2 + $0x200] sm:$0xff] }
  0x27   :  { %452 = vmatpush.msrb.mxu3 %v433_v20  ;;  %316 = vmatpush.msrb.mxu1 %v432_v26  ;;  %v142_v55 = vsel %vm136_vm1, %v140_v49, %v141_v50  ;;  %v144_v4 = vsel %vm136_vm1, %v138_v47, %v143_v63  ;;  %v280_v15 = vrot.slane %v742_v43, 2  ;;  %v281_v16 = vrot.slane %v739_v42, 2 }
  0x28   :  { %437 = vmatpush.msrb.mxu2 %v416_v24  ;;  %294 = vmatpush.msrb.mxu0 %v415_v30  ;;  %v146_v5 = vsel %vm136_vm1, %v141_v50, %v145_v1  ;;  %v285_v17 = vrot.slane %v787_v60, 2  ;;  %v279_v20 = vsel %vm276_vm3, %v277_v11, %v278_v12  ;;  %v284_v21 = vsel %vm276_vm3, %v278_v12, %v283_v13 }
  0x29   :  { %453 = vmatpush.msrb.mxu3 %v432_v26  ;;  %317 = vmatpush.msrb.mxu1 %v431_v32  ;;  %v282_v22 = vsel %vm276_vm3, %v280_v15, %v281_v16 }
  0x2a   :  { %438 = vmatpush.msrb.mxu2 %v415_v30  ;;  %295 = vmatpush.msrb.mxu0 %v414_v36  ;;  %v286_v23 = vsel %vm276_vm3, %v281_v16, %v285_v17 }
  0x2b   :  { %454 = vmatpush.msrb.mxu3 %v431_v32  ;;  %318 = vmatpush.msrb.mxu1 %v430_v38 }
  0x2c   :  { %439 = vmatpush.msrb.mxu2 %v414_v36  ;;  %296 = vmatpush.msrb.mxu0 %v413_v41 }
  0x2d   :  { %455 = vmatpush.msrb.mxu3 %v430_v38  ;;  %319 = vmatpush.msrb.mxu1 %v429_v44 }
  0x2e   :  { %440 = vmatpush.msrb.mxu2 %v413_v41  ;;  %297 = vmatpush.msrb.mxu0 %v412_v45 }
  0x2f   :  { %456 = vmatpush.msrb.mxu3 %v429_v44  ;;  %320 = vmatpush.msrb.mxu1 %v428_v48 }
  0x30   :  { %441 = vmatpush.msrb.mxu2 %v412_v45  ;;  %298 = vmatpush.msrb.mxu0 %v411_v52 }
  0x31   :  { %457 = vmatpush.msrb.mxu3 %v428_v48  ;;  %400 = vmatmul.msk.f32.vlgmr.msra.gmra.mxu2 %vm758_vm2, %v51_v33 }
  0x32   :  { %442 = vmatpush.msrb.mxu2 %v411_v52  ;;  %321 = vmatpush.msrb.mxu1 %v427_v53 }
  0x33   :  { %458 = vmatpush.msrb.mxu3 %v427_v53  ;;  %167 = vmatmul.f32.vlgmr.msra.gmra.mxu0 %v139_v54 }
  0x34   :  { %190 = vmatmul.f32.vlgmr.msra.gmra.mxu1 %v142_v55  ;;  %402 = vmatmul.msk.f32.vlgmr.msra.gmra.mxu3 %vm758_vm2, %v52_v35 }
  0x35   :  { %299 = vmatpush.msrb.mxu0 %v410_v56  ;;  %443 = vmatpush.msrb.mxu2 %v410_v56 }
  0x36   :  { %322 = vmatpush.msrb.mxu1 %v426_v57  ;;  %459 = vmatpush.msrb.mxu3 %v426_v57 }
  0x37   :  { %300 = vmatpush.msrb.mxu0 %v409_v59  ;;  %444 = vmatpush.msrb.mxu2 %v409_v59 }
  0x38   :  { %323 = vmatpush.msrb.mxu1 %v425_v61  ;;  %460 = vmatpush.msrb.mxu3 %v425_v61 }
  0x39   :  { %301 = vmatpush.msrb.mxu0 %v408_v62  ;;  %445 = vmatpush.msrb.mxu2 %v408_v62 }
  0x3a   :  { %324 = vmatpush.msrb.mxu1 %v424_v0  ;;  %461 = vmatpush.msrb.mxu3 %v424_v0 }
  0x3b   :  { %216 = vmatmul.f32.gmra.mxu2 %v730_v39  ;;  %302 = vmatpush.msrb.mxu0 %v407_v2 }
  0x3c   :  { %446 = vmatpush.msrb.mxu2 %v407_v2  ;;  %325 = vmatpush.msrb.mxu1 %v423_v3 }
  0x3d   :  { %462 = vmatpush.msrb.mxu3 %v423_v3  ;;  %170 = vmatmul.f32.gmra.mxu0 %v144_v4 }
  0x3e   :  { %193 = vmatmul.f32.gmra.mxu1 %v146_v5  ;;  %239 = vmatmul.f32.gmra.mxu3 %v739_v42 }
  0x3f   :  { %303 = vmatpush.msrb.mxu0 %v406_v6  ;;  %447 = vmatpush.msrb.mxu2 %v406_v6 }
  0x40   :  { %326 = vmatpush.msrb.mxu1 %v422_v7  ;;  %463 = vmatpush.msrb.mxu3 %v422_v7 }
  0x41   :  { %304 = vmatpush.msrb.mxu0 %v405_v8  ;;  %448 = vmatpush.msrb.mxu2 %v405_v8 }
  0x42   :  { %327 = vmatpush.msrb.mxu1 %v421_v9  ;;  %464 = vmatpush.msrb.mxu3 %v421_v9 }
  0x43   :  { %305 = vmatpush.msrb.mxu0 %v404_v10  ;;  %449 = vmatpush.msrb.mxu2 %v404_v10 }
  0x44   :  { %328 = vmatpush.msrb.mxu1 %v420_v14  ;;  %465 = vmatpush.msrb.mxu3 %v420_v14 }
  0x45   :  { %306 = vmatpush.msrb.mxu0 %v403_v18  ;;  %450 = vmatpush.msrb.mxu2 %v403_v18 }
  0x46   :  { %329 = vmatpush.msrb.mxu1 %v419_v19  ;;  %466 = vmatpush.msrb.mxu3 %v419_v19 }
  0x47   :  { %307 = vmatmul.f32.vlgmr.msrb.gmra.mxu0 %v279_v20  ;;  %310 = vmatmul.f32.vlgmr.msrb.gmra.mxu2 %v284_v21 }
  0x48   :  { %330 = vmatmul.f32.vlgmr.msrb.gmra.mxu1 %v282_v22  ;;  %333 = vmatmul.f32.vlgmr.msrb.gmra.mxu3 %v286_v23 }
  0xb0   :  { %v168_v24 = vpop.f32.mrf.mxu0 }
  0xb1   :  { %v191_v25 = vpop.f32.mrf.mxu1 }
  0xb2   :  { %v192_v30 = vadd.f32 %v191_v25, %v168_v24 }
  0xb4   :  { %v214_v27 = vpop.f32.mrf.mxu2 }
  0xb5   :  { %v215_v32 = vadd.f32 %v214_v27, %v192_v30 }
  0xb7   :  { %v237_v26 = vpop.f32.mrf.mxu3 }
  0xb8   :  { %v238_v37 = vadd.f32 %v237_v26, %v215_v32 }
  0xba   :  { %v171_v28 = vpop.f32.mrf.mxu0 }
  0xbb   :  { %v194_v29 = vpop.f32.mrf.mxu1 }
  0xbc   :  { %v195_v34 = vadd.f32 %v194_v29, %v171_v28 }
  0xbe   :  { %v217_v33 = vpop.f32.mrf.mxu2 }
  0xbf   :  { %v218_v39 = vadd.f32 %v217_v33, %v195_v34 }
  0xc1   :  { %v240_v31 = vpop.f32.mrf.mxu3 }
  0xc2   :  { %v241_v43 = vadd.f32 %v240_v31, %v218_v39 }
  0xc4   :  { %v308_v35 = vpop.f32.mrf.mxu0 }
  0xc5   :  { %v331_v36 = vpop.f32.mrf.mxu1 }
  0xc6   :  { %v332_v38 = vadd.f32 %v331_v36, %v308_v35 }
  0xc8   :  { %v337_v40 = vadd.f32 %v332_v38, %v238_v37 }
  0xca   :  { %339 = vst [vmem:[%s857_s3] sm:$0xff] %v337_v40  ;;  %v311_v41 = vpop.f32.mrf.mxu2  ;;  %v348_v46 = vmul.f32 %v337_v40, %v337_v40 }
  0xcb   :  { %v334_v42 = vpop.f32.mrf.mxu3 }
  0xcc   :  { %v335_v44 = vadd.f32 %v334_v42, %v311_v41 }
  0xce   :  { %v338_v45 = vadd.f32 %v335_v44, %v241_v43 }
  0xd0   :  { %340 = vst [vmem:[%s857_s3 + $0x8] sm:$0xff] %v338_v45  ;;  %v341_v47 = vadd.f32 %v338_v45, %v337_v40  ;;  %v349_v48 = vmul.f32 %v338_v45, %v338_v45 }
  0xd2   :  { %v342_v49 = vrot.slane %v341_v47, 4  ;;  %v350_v50 = vadd.f32 %v349_v48, %v348_v46 }
  0xd4   :  { %v343_v51 = vadd.f32 %v342_v49, %v341_v47  ;;  %v351_v52 = vrot.slane %v350_v50, 4 }
  0xd6   :  { %v344_v53 = vrot.slane %v343_v51, 2  ;;  %v352_v54 = vadd.f32 %v351_v52, %v350_v50 }
  0xd8   :  { %v345_v55 = vadd.f32 %v344_v53, %v343_v51  ;;  %v353_v56 = vrot.slane %v352_v54, 2 }
  0xda   :  { %v346_v57 = vrot.slane %v345_v55, 1  ;;  %v354_v58 = vadd.f32 %v353_v56, %v352_v54 }
  0xdc   :  { %v355_v59 = vrot.slane %v354_v58, 1  ;;  %v347_v60 = vadd.f32 %v346_v57, %v345_v55 }
  0xde   :  { %v356_v61 = vadd.f32 %v355_v59, %v354_v58 }
  0xe0   :  { %v357_v62 = vsel %vm50_vm0, %v347_v60, %v356_v61 }
  0xe1   :  { %358 = vst [vmem:[%s858_s4] sm:$0x3] %v357_v62 }

// kernel: two_conv_block.5
= control target key start
LH: loop header
LB: loop body
LE: loop exit
PB: predicated region body
PF: predicated region fallthrough
CT: control target
= control target key end

     0   :  { %s58_s0 = inlined_call_operand.vmem [shape: f32[1,16,128], index: 0, kind: input, shape index: {}]   ;;  %s59_s1 = inlined_call_operand.vmem [shape: f32[2,128], index: 1, kind: input, shape index: {}]   ;;  %s60_s2 = inlined_call_operand.vmem [shape: f32[1,16,128], index: 2, kind: output, shape index: {}]  }
   0x1   :  { %v11_v0 = vld [vmem:[%s59_s1] sm:$0x3]  ;;  %v13_v2 = vld [vmem:[%s58_s0 + $0x8] sm:$0xff] }
   0x2   :  { %v12_v1 = vld [vmem:[%s58_s0] sm:$0xff]  ;;  %v14_v3 = vperm.slane %v11_v0, 0  ;;  %v17_v4 = vperm.slane %v11_v0, 1 }
   0x4   :  { %v15_v5 = vmul.f32 %v14_v3, %v12_v1  ;;  %v16_v6 = vmul.f32 %v14_v3, %v13_v2 }
   0x6   :  { %v18_v7 = vadd.f32 %v17_v4, %v15_v5  ;;  %v19_v8 = vadd.f32 %v17_v4, %v16_v6 }
   0x8   :  { %v20_v9 = vmax.f32 %v18_v7, 0.0  ;;  %v21_v10 = vmax.f32 %v19_v8, 0.0 }
   0xa   :  { %22 = vst [vmem:[%s60_s2] sm:$0xff] %v20_v9 }
   0xb   :  { %23 = vst [vmem:[%s60_s2 + $0x8] sm:$0xff] %v21_v10 }

</bundles_post_ra>
